<compile_context>
chip_gen: v7x
topology: tpu7x:2x2x1
jax: 0.10.0
libtpu: 0.0.40
codegen_flags: <defaults>
</compile_context>

<pallas_src>
import jax
import jax.numpy as jnp
from jax import lax
from jax.experimental import pallas as pl
from jax.experimental.pallas import tpu as pltpu

# ---- small T5-style config (module's forward implies: encoder -> [:,0,:] -> Linear) ----
B = 2              # batch
S = 8              # sequence length
D = 32             # d_model
H = 4              # num attention heads
DK = 8             # d_kv per head
INNER = H * DK     # 32
FF = 64            # d_ff
L = 2              # encoder layers
VOCAB = 64
NUM_LABELS = 3
NUM_LABELS_PAD = 128   # lane-dense padded classifier width (sliced back in JAX)
NUM_BUCKETS = 32
MAX_DISTANCE = 128
EPS = 1e-6         # T5LayerNorm eps
G = B * H          # merged (batch, head) leading axis for the attention matmuls
BS = B * S         # merged (batch, seq) row axis for all projection matmuls


def _rmsnorm(x, w):
    # T5LayerNorm: RMS norm, no mean subtraction, no bias.
    var = jnp.mean(x * x, axis=-1, keepdims=True)
    return x * lax.rsqrt(var + EPS) * w


# ----------------------------- Pallas kernel ----------------------------------------
def t5_encoder_classifier_kernel(
    x_ref,      # (B, S, D)            f32  embedded tokens
    bias_ref,   # (G, S, S)            f32  rel-pos + mask bias, G = B*H (b-major)
    hmask_ref,  # (1, H, 1, INNER)     bf16 per-head lane-selection mask (0/1)
    ln1_ref,    # (L, D)               f32
    wq_ref,     # (L, D, INNER)        bf16
    wk_ref,     # (L, D, INNER)        bf16
    wv_ref,     # (L, D, INNER)        bf16
    wo_ref,     # (L, INNER, D)        bf16
    ln2_ref,    # (L, D)               f32
    wi_ref,     # (L, D, FF)           bf16
    wo2_ref,    # (L, FF, D)           bf16
    lnf_ref,    # (1, D)               f32
    clsw_ref,   # (D, NUM_LABELS_PAD)  bf16
    clsb_ref,   # (1, NUM_LABELS_PAD)  f32
    out_ref,    # (B, NUM_LABELS_PAD)  f32
):
    f32, bf16 = jnp.float32, jnp.bfloat16

    h = x_ref[...]                    # (B, S, D) f32
    bias = bias_ref[...]              # (G, S, S) f32
    hmask = hmask_ref[...]            # (1, H, 1, INNER) bf16

    for l in range(L):                # static unroll over encoder layers
        # ---------------- self-attention block ----------------
        # collapsed projections: one (B*S, D) @ (D, INNER) matmul each
        n2d = _rmsnorm(h, ln1_ref[l]).reshape(BS, D).astype(bf16)
        q = jnp.dot(n2d, wq_ref[l], preferred_element_type=f32)   # (BS, INNER) f32
        k = jnp.dot(n2d, wk_ref[l], preferred_element_type=f32)
        v = jnp.dot(n2d, wv_ref[l], preferred_element_type=f32)

        # head split without lane reshapes: broadcast rows over H, select each
        # head's DK columns with a disjoint 0/1 lane mask.
        q_g = jnp.broadcast_to(q.astype(bf16).reshape(B, 1, S, INNER),
                               (B, H, S, INNER)).reshape(G, S, INNER)
        k_g = (k.astype(bf16).reshape(B, 1, S, INNER) * hmask).reshape(G, S, INNER)
        v_g = (v.astype(bf16).reshape(B, 1, S, INNER) * hmask).reshape(G, S, INNER)

        # T5 does NOT scale scores by 1/sqrt(d_kv)
        scores = jnp.einsum('gqe,gke->gqk', q_g, k_g,
                            preferred_element_type=f32) + bias     # (G, S, S) f32
        scores = scores - jnp.max(scores, axis=-1, keepdims=True)
        p = jnp.exp(scores)
        p = p * pl.reciprocal(jnp.sum(p, axis=-1, keepdims=True), approx=True)

        # per-head context is nonzero only in that head's INNER lanes, so the
        # sum over H is exactly concat(heads) in the original column order.
        ctx = jnp.einsum('gqk,gke->gqe', p.astype(bf16), v_g,
                         preferred_element_type=f32)               # (G, S, INNER)
        ctx_cat = ctx.reshape(B, H, S, INNER).sum(axis=1)          # (B, S, INNER)

        # single output projection: concat(ctx_h) @ Wo == sum_h ctx_h @ Wo_h
        attn = jnp.dot(ctx_cat.reshape(BS, INNER).astype(bf16), wo_ref[l],
                       preferred_element_type=f32)                 # (BS, D)
        h = h + attn.reshape(B, S, D)

        # ---------------- feed-forward block (DenseReluDense) ----------------
        n2 = _rmsnorm(h, ln2_ref[l]).reshape(BS, D).astype(bf16)
        ff = jnp.maximum(jnp.dot(n2, wi_ref[l], preferred_element_type=f32), 0.0)
        h = h + jnp.dot(ff.astype(bf16), wo2_ref[l],
                        preferred_element_type=f32).reshape(B, S, D)

    # final RMSNorm + classifier head on the CLS token only (sliced before head).
    # TODO(synk): nn.Dropout(0.3) is identity in eval/inference mode; nothing to do.
    h_cls = _rmsnorm(h[:, 0, :], lnf_ref[0])                        # (B, D)
    out_ref[...] = jnp.dot(h_cls.astype(bf16), clsw_ref[...],
                           preferred_element_type=f32) + clsb_ref[...]


def t5_classify(x_emb, bias, enc_params):
    """Single-invocation Pallas call: whole batch + all weights resident in VMEM."""
    ln1, wq, wk, wv, wo, ln2, wi, wo2, lnf, clsw, clsb = enc_params
    bf16 = jnp.bfloat16

    # Weights kept in natural layouts and pre-cast to bf16 ONCE outside the kernel.
    wq_b, wk_b, wv_b = wq.astype(bf16), wk.astype(bf16), wv.astype(bf16)
    wo_b, wi_b, wo2_b = wo.astype(bf16), wi.astype(bf16), wo2.astype(bf16)

    # Lane-dense padded classifier (zero-padded columns); sliced back below.
    clsw_p = jnp.zeros((D, NUM_LABELS_PAD), bf16).at[:, :NUM_LABELS].set(clsw.astype(bf16))
    clsb_p = jnp.zeros((1, NUM_LABELS_PAD), jnp.float32).at[:, :NUM_LABELS].set(clsb)

    bias_g = bias.reshape(G, S, S)                       # (B*H, S, S), b-major

    # per-head lane-selection mask: head h owns columns [h*DK, (h+1)*DK)
    head_mask = (jnp.arange(INNER)[None, :] // DK
                 == jnp.arange(H)[:, None]).astype(bf16).reshape(1, H, 1, INNER)

    n_inputs = 14
    vmem_spec = pl.BlockSpec(memory_space=pltpu.MemorySpace.VMEM)

    out = pl.pallas_call(
        t5_encoder_classifier_kernel,
        out_shape=jax.ShapeDtypeStruct((B, NUM_LABELS_PAD), jnp.float32),
        in_specs=[vmem_spec] * n_inputs,
        out_specs=vmem_spec,
    )(x_emb, bias_g, head_mask, ln1, wq_b, wk_b, wv_b, wo_b, ln2, wi_b, wo2_b,
      lnf, clsw_p, clsb_p)
    return out[:, :NUM_LABELS]


# ----------------------------- plain-JAX glue ----------------------------------------
def relative_position_bucket(relative_position,
                             num_buckets=NUM_BUCKETS, max_distance=MAX_DISTANCE):
    # bidirectional bucketing (T5 encoder)
    num_buckets = num_buckets // 2
    buckets = (relative_position > 0).astype(jnp.int32) * num_buckets
    n = jnp.abs(relative_position)
    max_exact = num_buckets // 2
    is_small = n < max_exact
    val_if_large = max_exact + (
        jnp.log(jnp.maximum(n, 1).astype(jnp.float32) / max_exact)
        / jnp.log(max_distance / max_exact)
        * (num_buckets - max_exact)
    ).astype(jnp.int32)
    val_if_large = jnp.minimum(val_if_large, num_buckets - 1)
    return buckets + jnp.where(is_small, n, val_if_large)


def compute_position_bias(rel_bias_table, seq_len):
    ctx = jnp.arange(seq_len)[:, None]
    mem = jnp.arange(seq_len)[None, :]
    buckets = relative_position_bucket(mem - ctx)      # (S, S)
    values = rel_bias_table[buckets]                   # (S, S, H)
    return jnp.transpose(values, (2, 0, 1))            # (H, S, S)


def init_params(key):
    ks = jax.random.split(key, 10)
    s = 0.05
    embed = jax.random.normal(ks[0], (VOCAB, D), jnp.float32) * s
    rel_bias = jax.random.normal(ks[1], (NUM_BUCKETS, H), jnp.float32) * s
    ln1 = jnp.ones((L, D), jnp.float32)
    wq = jax.random.normal(ks[2], (L, D, INNER), jnp.float32) * s
    wk = jax.random.normal(ks[3], (L, D, INNER), jnp.float32) * s
    wv = jax.random.normal(ks[4], (L, D, INNER), jnp.float32) * s
    wo = jax.random.normal(ks[5], (L, INNER, D), jnp.float32) * s
    ln2 = jnp.ones((L, D), jnp.float32)
    wi = jax.random.normal(ks[6], (L, D, FF), jnp.float32) * s
    wo2 = jax.random.normal(ks[7], (L, FF, D), jnp.float32) * s
    lnf = jnp.ones((1, D), jnp.float32)
    clsw = jax.random.normal(ks[8], (D, NUM_LABELS), jnp.float32) * s
    clsb = jnp.zeros((1, NUM_LABELS), jnp.float32)
    enc_params = (ln1, wq, wk, wv, wo, ln2, wi, wo2, lnf, clsw, clsb)
    return embed, rel_bias, enc_params


def reference_forward(x_emb, bias, enc_params):
    # pure-JAX f32 reference mirroring HF T5 encoder + classifier head (eval mode)
    ln1, wq, wk, wv, wo, ln2, wi, wo2, lnf, clsw, clsb = enc_params
    hp = lax.Precision.HIGHEST
    h = x_emb
    for l in range(L):
        n = _rmsnorm(h, ln1[l])
        q = jnp.einsum('bsd,de->bse', n, wq[l], precision=hp)
        k = jnp.einsum('bsd,de->bse', n, wk[l], precision=hp)
        v = jnp.einsum('bsd,de->bse', n, wv[l], precision=hp)
        qh = q.reshape(B, S, H, DK).transpose(0, 2, 1, 3)
        kh = k.reshape(B, S, H, DK).transpose(0, 2, 1, 3)
        vh = v.reshape(B, S, H, DK).transpose(0, 2, 1, 3)
        scores = jnp.einsum('bhqd,bhkd->bhqk', qh, kh, precision=hp) + bias
        p = jax.nn.softmax(scores, axis=-1)
        ctx = jnp.einsum('bhqk,bhkd->bhqd', p, vh, precision=hp)
        ctx = ctx.transpose(0, 2, 1, 3).reshape(B, S, INNER)
        h = h + jnp.einsum('bse,ed->bsd', ctx, wo[l], precision=hp)
        n2 = _rmsnorm(h, ln2[l])
        ff = jax.nn.relu(jnp.einsum('bsd,df->bsf', n2, wi[l], precision=hp))
        h = h + jnp.einsum('bsf,fd->bsd', ff, wo2[l], precision=hp)
    h = _rmsnorm(h, lnf[0])
    cls = h[:, 0, :]
    return jnp.einsum('bd,dn->bn', cls, clsw, precision=hp) + clsb[0]


if __name__ == "__main__":
    key = jax.random.PRNGKey(0)
    pkey, ikey = jax.random.split(key)
    embed, rel_bias, enc_params = init_params(pkey)

    input_ids = jax.random.randint(ikey, (B, S), 0, VOCAB, dtype=jnp.int32)
    attention_mask = jnp.ones((B, S), jnp.int32).at[1, 6:].set(0)   # second example has padding

    # glue: embedding gather + (position bias + attention-mask bias), outside the kernel
    x_emb = embed[input_ids]                                        # (B, S, D)
    pos_bias = compute_position_bias(rel_bias, S)                   # (H, S, S)
    # large finite negative instead of finfo(f32).min (safer numerically)
    mask_bias = (1.0 - attention_mask.astype(jnp.float32))[:, None, None, :] * (-1e9)
    bias = pos_bias[None, :, :, :] + mask_bias                      # (B, H, S, S)

    logits = t5_classify(x_emb, bias, enc_params)
    logits = jax.block_until_ready(logits)

    ref = reference_forward(x_emb, bias, enc_params)
    assert logits.shape == (B, NUM_LABELS)
    # bf16 MXU operands vs f32 reference -> modest tolerance
    assert jnp.allclose(logits, ref, atol=2e-2, rtol=2e-2), (logits, ref)
    print("KERNEL_OK")
</pallas_src>

<mosaic_0001>
module attributes {stable_mosaic.version = 11 : i64} {
  func.func @t5_encoder_classifier_kernel(%arg0: memref<2x8x32xf32, #tpu.memory_space<vmem>>, %arg1: memref<8x8x8xf32, #tpu.memory_space<vmem>>, %arg2: memref<1x4x1x32xbf16, #tpu.memory_space<vmem>>, %arg3: memref<2x32xf32, #tpu.memory_space<vmem>>, %arg4: memref<2x32x32xbf16, #tpu.memory_space<vmem>>, %arg5: memref<2x32x32xbf16, #tpu.memory_space<vmem>>, %arg6: memref<2x32x32xbf16, #tpu.memory_space<vmem>>, %arg7: memref<2x32x32xbf16, #tpu.memory_space<vmem>>, %arg8: memref<2x32xf32, #tpu.memory_space<vmem>>, %arg9: memref<2x32x64xbf16, #tpu.memory_space<vmem>>, %arg10: memref<2x64x32xbf16, #tpu.memory_space<vmem>>, %arg11: memref<1x32xf32, #tpu.memory_space<vmem>>, %arg12: memref<32x128xbf16, #tpu.memory_space<vmem>>, %arg13: memref<1x128xf32, #tpu.memory_space<vmem>>, %arg14: memref<2x128xf32, #tpu.memory_space<vmem>>) attributes {dimension_semantics = [], scalar_prefetch = 0 : i64, scratch_operands = 0 : i64, tpu.core_type = #tpu.core_type<tc>} {
    %c0 = arith.constant 0 : index
    %c0_0 = arith.constant 0 : index
    %c0_1 = arith.constant 0 : index
    %0 = vector.load %arg0[%c0, %c0_0, %c0_1] : memref<2x8x32xf32, #tpu.memory_space<vmem>>, vector<2x8x32xf32>
    %c0_2 = arith.constant 0 : index
    %c0_3 = arith.constant 0 : index
    %c0_4 = arith.constant 0 : index
    %1 = vector.load %arg1[%c0_2, %c0_3, %c0_4] : memref<8x8x8xf32, #tpu.memory_space<vmem>>, vector<8x8x8xf32>
    %c0_5 = arith.constant 0 : index
    %c0_6 = arith.constant 0 : index
    %c0_7 = arith.constant 0 : index
    %c0_8 = arith.constant 0 : index
    %2 = vector.load %arg2[%c0_5, %c0_6, %c0_7, %c0_8] : memref<1x4x1x32xbf16, #tpu.memory_space<vmem>>, vector<1x4x1x32xbf16>
    %c0_9 = arith.constant 0 : index
    %c0_10 = arith.constant 0 : index
    %3 = vector.load %arg3[%c0_9, %c0_10] : memref<2x32xf32, #tpu.memory_space<vmem>>, vector<1x32xf32>
    %4 = vector.shape_cast %3 : vector<1x32xf32> to vector<32xf32>
    %5 = arith.mulf %0, %0 : vector<2x8x32xf32>
    %cst = arith.constant dense<0.000000e+00> : vector<2x8xf32>
    %6 = vector.multi_reduction <add>, %5, %cst [2] : vector<2x8x32xf32> to vector<2x8xf32>
    %7 = vector.shape_cast %6 : vector<2x8xf32> to vector<2x8x1xf32>
    %cst_11 = arith.constant 3.200000e+01 : f32
    %8 = vector.broadcast %cst_11 : f32 to vector<2x8x1xf32>
    %9 = arith.divf %7, %8 : vector<2x8x1xf32>
    %cst_12 = arith.constant 9.99999997E-7 : f32
    %10 = vector.broadcast %cst_12 : f32 to vector<2x8x1xf32>
    %11 = arith.addf %9, %10 : vector<2x8x1xf32>
    %12 = math.rsqrt %11 : vector<2x8x1xf32>
    %13 = vector.broadcast %12 : vector<2x8x1xf32> to vector<2x8x32xf32>
    %14 = arith.mulf %0, %13 : vector<2x8x32xf32>
    %15 = vector.shape_cast %4 : vector<32xf32> to vector<1x1x32xf32>
    %16 = vector.broadcast %15 : vector<1x1x32xf32> to vector<2x8x32xf32>
    %17 = arith.mulf %14, %16 : vector<2x8x32xf32>
    %18 = vector.shape_cast %17 : vector<2x8x32xf32> to vector<16x32xf32>
    %19 = arith.truncf %18 : vector<16x32xf32> to vector<16x32xbf16>
    %c0_13 = arith.constant 0 : index
    %c0_14 = arith.constant 0 : index
    %c0_15 = arith.constant 0 : index
    %20 = vector.load %arg4[%c0_13, %c0_14, %c0_15] : memref<2x32x32xbf16, #tpu.memory_space<vmem>>, vector<1x32x32xbf16>
    %21 = vector.shape_cast %20 : vector<1x32x32xbf16> to vector<32x32xbf16>
    %cst_16 = arith.constant dense<0.000000e+00> : vector<16x32xf32>
    %22 = tpu.matmul %19, %21, %cst_16 {dimension_numbers = #tpu.dot_dimension_numbers<[1], [0], [0], [1], [0, 0, 1, 1], [], []>} : vector<16x32xbf16>, vector<32x32xbf16>, vector<16x32xf32> -> vector<16x32xf32>
    %c0_17 = arith.constant 0 : index
    %c0_18 = arith.constant 0 : index
    %c0_19 = arith.constant 0 : index
    %23 = vector.load %arg5[%c0_17, %c0_18, %c0_19] : memref<2x32x32xbf16, #tpu.memory_space<vmem>>, vector<1x32x32xbf16>
    %24 = vector.shape_cast %23 : vector<1x32x32xbf16> to vector<32x32xbf16>
    %cst_20 = arith.constant dense<0.000000e+00> : vector<16x32xf32>
    %25 = tpu.matmul %19, %24, %cst_20 {dimension_numbers = #tpu.dot_dimension_numbers<[1], [0], [0], [1], [0, 0, 1, 1], [], []>} : vector<16x32xbf16>, vector<32x32xbf16>, vector<16x32xf32> -> vector<16x32xf32>
    %c0_21 = arith.constant 0 : index
    %c0_22 = arith.constant 0 : index
    %c0_23 = arith.constant 0 : index
    %26 = vector.load %arg6[%c0_21, %c0_22, %c0_23] : memref<2x32x32xbf16, #tpu.memory_space<vmem>>, vector<1x32x32xbf16>
    %27 = vector.shape_cast %26 : vector<1x32x32xbf16> to vector<32x32xbf16>
    %cst_24 = arith.constant dense<0.000000e+00> : vector<16x32xf32>
    %28 = tpu.matmul %19, %27, %cst_24 {dimension_numbers = #tpu.dot_dimension_numbers<[1], [0], [0], [1], [0, 0, 1, 1], [], []>} : vector<16x32xbf16>, vector<32x32xbf16>, vector<16x32xf32> -> vector<16x32xf32>
    %29 = arith.truncf %22 : vector<16x32xf32> to vector<16x32xbf16>
    %30 = vector.shape_cast %29 : vector<16x32xbf16> to vector<2x1x8x32xbf16>
    %31 = vector.shape_cast %30 : vector<2x1x8x32xbf16> to vector<2x1x8x32xbf16>
    %32 = vector.broadcast %31 : vector<2x1x8x32xbf16> to vector<2x4x8x32xbf16>
    %33 = vector.shape_cast %32 : vector<2x4x8x32xbf16> to vector<8x8x32xbf16>
    %34 = arith.truncf %25 : vector<16x32xf32> to vector<16x32xbf16>
    %35 = vector.shape_cast %34 : vector<16x32xbf16> to vector<2x1x8x32xbf16>
    %36 = vector.broadcast %35 : vector<2x1x8x32xbf16> to vector<2x4x8x32xbf16>
    %37 = vector.broadcast %2 : vector<1x4x1x32xbf16> to vector<2x4x8x32xbf16>
    %38 = arith.mulf %36, %37 : vector<2x4x8x32xbf16>
    %39 = vector.shape_cast %38 : vector<2x4x8x32xbf16> to vector<8x8x32xbf16>
    %40 = arith.truncf %28 : vector<16x32xf32> to vector<16x32xbf16>
    %41 = vector.shape_cast %40 : vector<16x32xbf16> to vector<2x1x8x32xbf16>
    %42 = vector.broadcast %41 : vector<2x1x8x32xbf16> to vector<2x4x8x32xbf16>
    %43 = vector.broadcast %2 : vector<1x4x1x32xbf16> to vector<2x4x8x32xbf16>
    %44 = arith.mulf %42, %43 : vector<2x4x8x32xbf16>
    %45 = vector.shape_cast %44 : vector<2x4x8x32xbf16> to vector<8x8x32xbf16>
    "tpu.trace_start"() <{level = 10 : i32, message = "gqe,gke->gqk"}> : () -> ()
    %cst_25 = arith.constant dense<0.000000e+00> : vector<8x8x8xf32>
    %46 = tpu.matmul %33, %39, %cst_25 {dimension_numbers = #tpu.dot_dimension_numbers<[2], [2], [1], [1], [0, 0, 0, 1, 1, 1], [0], [0]>} : vector<8x8x32xbf16>, vector<8x8x32xbf16>, vector<8x8x8xf32> -> vector<8x8x8xf32>
    "tpu.trace_stop"() : () -> ()
    %47 = arith.addf %46, %1 : vector<8x8x8xf32>
    %cst_26 = arith.constant dense<0xFF800000> : vector<8x8xf32>
    %48 = vector.multi_reduction <maximumf>, %47, %cst_26 [2] : vector<8x8x8xf32> to vector<8x8xf32>
    %49 = vector.shape_cast %48 : vector<8x8xf32> to vector<8x8x1xf32>
    %50 = vector.broadcast %49 : vector<8x8x1xf32> to vector<8x8x8xf32>
    %51 = arith.subf %47, %50 : vector<8x8x8xf32>
    %52 = math.exp %51 : vector<8x8x8xf32>
    %cst_27 = arith.constant dense<0.000000e+00> : vector<8x8xf32>
    %53 = vector.multi_reduction <add>, %52, %cst_27 [2] : vector<8x8x8xf32> to vector<8x8xf32>
    %54 = vector.shape_cast %53 : vector<8x8xf32> to vector<8x8x1xf32>
    %55 = tpu.reciprocal %54 {approx = true} : vector<8x8x1xf32> -> vector<8x8x1xf32>
    %56 = vector.broadcast %55 : vector<8x8x1xf32> to vector<8x8x8xf32>
    %57 = arith.mulf %52, %56 : vector<8x8x8xf32>
    %58 = arith.truncf %57 : vector<8x8x8xf32> to vector<8x8x8xbf16>
    "tpu.trace_start"() <{level = 10 : i32, message = "gqk,gke->gqe"}> : () -> ()
    %cst_28 = arith.constant dense<0.000000e+00> : vector<8x8x32xf32>
    %59 = tpu.matmul %58, %45, %cst_28 {dimension_numbers = #tpu.dot_dimension_numbers<[2], [1], [1], [2], [0, 0, 0, 1, 1, 2], [0], [0]>} : vector<8x8x8xbf16>, vector<8x8x32xbf16>, vector<8x8x32xf32> -> vector<8x8x32xf32>
    "tpu.trace_stop"() : () -> ()
    %60 = vector.shape_cast %59 : vector<8x8x32xf32> to vector<2x4x8x32xf32>
    %cst_29 = arith.constant dense<0.000000e+00> : vector<2x8x32xf32>
    %61 = vector.multi_reduction <add>, %60, %cst_29 [1] : vector<2x4x8x32xf32> to vector<2x8x32xf32>
    %62 = vector.shape_cast %61 : vector<2x8x32xf32> to vector<16x32xf32>
    %63 = arith.truncf %62 : vector<16x32xf32> to vector<16x32xbf16>
    %c0_30 = arith.constant 0 : index
    %c0_31 = arith.constant 0 : index
    %c0_32 = arith.constant 0 : index
    %64 = vector.load %arg7[%c0_30, %c0_31, %c0_32] : memref<2x32x32xbf16, #tpu.memory_space<vmem>>, vector<1x32x32xbf16>
    %65 = vector.shape_cast %64 : vector<1x32x32xbf16> to vector<32x32xbf16>
    %cst_33 = arith.constant dense<0.000000e+00> : vector<16x32xf32>
    %66 = tpu.matmul %63, %65, %cst_33 {dimension_numbers = #tpu.dot_dimension_numbers<[1], [0], [0], [1], [0, 0, 1, 1], [], []>} : vector<16x32xbf16>, vector<32x32xbf16>, vector<16x32xf32> -> vector<16x32xf32>
    %67 = vector.shape_cast %66 : vector<16x32xf32> to vector<2x8x32xf32>
    %68 = arith.addf %0, %67 : vector<2x8x32xf32>
    %c0_34 = arith.constant 0 : index
    %c0_35 = arith.constant 0 : index
    %69 = vector.load %arg8[%c0_34, %c0_35] : memref<2x32xf32, #tpu.memory_space<vmem>>, vector<1x32xf32>
    %70 = vector.shape_cast %69 : vector<1x32xf32> to vector<32xf32>
    %71 = arith.mulf %68, %68 : vector<2x8x32xf32>
    %cst_36 = arith.constant dense<0.000000e+00> : vector<2x8xf32>
    %72 = vector.multi_reduction <add>, %71, %cst_36 [2] : vector<2x8x32xf32> to vector<2x8xf32>
    %73 = vector.shape_cast %72 : vector<2x8xf32> to vector<2x8x1xf32>
    %cst_37 = arith.constant 3.200000e+01 : f32
    %74 = vector.broadcast %cst_37 : f32 to vector<2x8x1xf32>
    %75 = arith.divf %73, %74 : vector<2x8x1xf32>
    %cst_38 = arith.constant 9.99999997E-7 : f32
    %76 = vector.broadcast %cst_38 : f32 to vector<2x8x1xf32>
    %77 = arith.addf %75, %76 : vector<2x8x1xf32>
    %78 = math.rsqrt %77 : vector<2x8x1xf32>
    %79 = vector.broadcast %78 : vector<2x8x1xf32> to vector<2x8x32xf32>
    %80 = arith.mulf %68, %79 : vector<2x8x32xf32>
    %81 = vector.shape_cast %70 : vector<32xf32> to vector<1x1x32xf32>
    %82 = vector.broadcast %81 : vector<1x1x32xf32> to vector<2x8x32xf32>
    %83 = arith.mulf %80, %82 : vector<2x8x32xf32>
    %84 = vector.shape_cast %83 : vector<2x8x32xf32> to vector<16x32xf32>
    %85 = arith.truncf %84 : vector<16x32xf32> to vector<16x32xbf16>
    %c0_39 = arith.constant 0 : index
    %c0_40 = arith.constant 0 : index
    %c0_41 = arith.constant 0 : index
    %86 = vector.load %arg9[%c0_39, %c0_40, %c0_41] : memref<2x32x64xbf16, #tpu.memory_space<vmem>>, vector<1x32x64xbf16>
    %87 = vector.shape_cast %86 : vector<1x32x64xbf16> to vector<32x64xbf16>
    %cst_42 = arith.constant dense<0.000000e+00> : vector<16x64xf32>
    %88 = tpu.matmul %85, %87, %cst_42 {dimension_numbers = #tpu.dot_dimension_numbers<[1], [0], [0], [1], [0, 0, 1, 1], [], []>} : vector<16x32xbf16>, vector<32x64xbf16>, vector<16x64xf32> -> vector<16x64xf32>
    %cst_43 = arith.constant 0.000000e+00 : f32
    %89 = vector.broadcast %cst_43 : f32 to vector<16x64xf32>
    %90 = arith.maximumf %88, %89 : vector<16x64xf32>
    %91 = arith.truncf %90 : vector<16x64xf32> to vector<16x64xbf16>
    %c0_44 = arith.constant 0 : index
    %c0_45 = arith.constant 0 : index
    %c0_46 = arith.constant 0 : index
    %92 = vector.load %arg10[%c0_44, %c0_45, %c0_46] : memref<2x64x32xbf16, #tpu.memory_space<vmem>>, vector<1x64x32xbf16>
    %93 = vector.shape_cast %92 : vector<1x64x32xbf16> to vector<64x32xbf16>
    %cst_47 = arith.constant dense<0.000000e+00> : vector<16x32xf32>
    %94 = tpu.matmul %91, %93, %cst_47 {dimension_numbers = #tpu.dot_dimension_numbers<[1], [0], [0], [1], [0, 0, 1, 1], [], []>} : vector<16x64xbf16>, vector<64x32xbf16>, vector<16x32xf32> -> vector<16x32xf32>
    %95 = vector.shape_cast %94 : vector<16x32xf32> to vector<2x8x32xf32>
    %96 = arith.addf %68, %95 : vector<2x8x32xf32>
    %c1 = arith.constant 1 : index
    %c0_48 = arith.constant 0 : index
    %97 = vector.load %arg3[%c1, %c0_48] : memref<2x32xf32, #tpu.memory_space<vmem>>, vector<1x32xf32>
    %98 = vector.shape_cast %97 : vector<1x32xf32> to vector<32xf32>
    %99 = arith.mulf %96, %96 : vector<2x8x32xf32>
    %cst_49 = arith.constant dense<0.000000e+00> : vector<2x8xf32>
    %100 = vector.multi_reduction <add>, %99, %cst_49 [2] : vector<2x8x32xf32> to vector<2x8xf32>
    %101 = vector.shape_cast %100 : vector<2x8xf32> to vector<2x8x1xf32>
    %cst_50 = arith.constant 3.200000e+01 : f32
    %102 = vector.broadcast %cst_50 : f32 to vector<2x8x1xf32>
    %103 = arith.divf %101, %102 : vector<2x8x1xf32>
    %cst_51 = arith.constant 9.99999997E-7 : f32
    %104 = vector.broadcast %cst_51 : f32 to vector<2x8x1xf32>
    %105 = arith.addf %103, %104 : vector<2x8x1xf32>
    %106 = math.rsqrt %105 : vector<2x8x1xf32>
    %107 = vector.broadcast %106 : vector<2x8x1xf32> to vector<2x8x32xf32>
    %108 = arith.mulf %96, %107 : vector<2x8x32xf32>
    %109 = vector.shape_cast %98 : vector<32xf32> to vector<1x1x32xf32>
    %110 = vector.broadcast %109 : vector<1x1x32xf32> to vector<2x8x32xf32>
    %111 = arith.mulf %108, %110 : vector<2x8x32xf32>
    %112 = vector.shape_cast %111 : vector<2x8x32xf32> to vector<16x32xf32>
    %113 = arith.truncf %112 : vector<16x32xf32> to vector<16x32xbf16>
    %c1_52 = arith.constant 1 : index
    %c0_53 = arith.constant 0 : index
    %c0_54 = arith.constant 0 : index
    %114 = vector.load %arg4[%c1_52, %c0_53, %c0_54] : memref<2x32x32xbf16, #tpu.memory_space<vmem>>, vector<1x32x32xbf16>
    %115 = vector.shape_cast %114 : vector<1x32x32xbf16> to vector<32x32xbf16>
    %cst_55 = arith.constant dense<0.000000e+00> : vector<16x32xf32>
    %116 = tpu.matmul %113, %115, %cst_55 {dimension_numbers = #tpu.dot_dimension_numbers<[1], [0], [0], [1], [0, 0, 1, 1], [], []>} : vector<16x32xbf16>, vector<32x32xbf16>, vector<16x32xf32> -> vector<16x32xf32>
    %c1_56 = arith.constant 1 : index
    %c0_57 = arith.constant 0 : index
    %c0_58 = arith.constant 0 : index
    %117 = vector.load %arg5[%c1_56, %c0_57, %c0_58] : memref<2x32x32xbf16, #tpu.memory_space<vmem>>, vector<1x32x32xbf16>
    %118 = vector.shape_cast %117 : vector<1x32x32xbf16> to vector<32x32xbf16>
    %cst_59 = arith.constant dense<0.000000e+00> : vector<16x32xf32>
    %119 = tpu.matmul %113, %118, %cst_59 {dimension_numbers = #tpu.dot_dimension_numbers<[1], [0], [0], [1], [0, 0, 1, 1], [], []>} : vector<16x32xbf16>, vector<32x32xbf16>, vector<16x32xf32> -> vector<16x32xf32>
    %c1_60 = arith.constant 1 : index
    %c0_61 = arith.constant 0 : index
    %c0_62 = arith.constant 0 : index
    %120 = vector.load %arg6[%c1_60, %c0_61, %c0_62] : memref<2x32x32xbf16, #tpu.memory_space<vmem>>, vector<1x32x32xbf16>
    %121 = vector.shape_cast %120 : vector<1x32x32xbf16> to vector<32x32xbf16>
    %cst_63 = arith.constant dense<0.000000e+00> : vector<16x32xf32>
    %122 = tpu.matmul %113, %121, %cst_63 {dimension_numbers = #tpu.dot_dimension_numbers<[1], [0], [0], [1], [0, 0, 1, 1], [], []>} : vector<16x32xbf16>, vector<32x32xbf16>, vector<16x32xf32> -> vector<16x32xf32>
    %123 = arith.truncf %116 : vector<16x32xf32> to vector<16x32xbf16>
    %124 = vector.shape_cast %123 : vector<16x32xbf16> to vector<2x1x8x32xbf16>
    %125 = vector.shape_cast %124 : vector<2x1x8x32xbf16> to vector<2x1x8x32xbf16>
    %126 = vector.broadcast %125 : vector<2x1x8x32xbf16> to vector<2x4x8x32xbf16>
    %127 = vector.shape_cast %126 : vector<2x4x8x32xbf16> to vector<8x8x32xbf16>
    %128 = arith.truncf %119 : vector<16x32xf32> to vector<16x32xbf16>
    %129 = vector.shape_cast %128 : vector<16x32xbf16> to vector<2x1x8x32xbf16>
    %130 = vector.broadcast %129 : vector<2x1x8x32xbf16> to vector<2x4x8x32xbf16>
    %131 = vector.broadcast %2 : vector<1x4x1x32xbf16> to vector<2x4x8x32xbf16>
    %132 = arith.mulf %130, %131 : vector<2x4x8x32xbf16>
    %133 = vector.shape_cast %132 : vector<2x4x8x32xbf16> to vector<8x8x32xbf16>
    %134 = arith.truncf %122 : vector<16x32xf32> to vector<16x32xbf16>
    %135 = vector.shape_cast %134 : vector<16x32xbf16> to vector<2x1x8x32xbf16>
    %136 = vector.broadcast %135 : vector<2x1x8x32xbf16> to vector<2x4x8x32xbf16>
    %137 = vector.broadcast %2 : vector<1x4x1x32xbf16> to vector<2x4x8x32xbf16>
    %138 = arith.mulf %136, %137 : vector<2x4x8x32xbf16>
    %139 = vector.shape_cast %138 : vector<2x4x8x32xbf16> to vector<8x8x32xbf16>
    "tpu.trace_start"() <{level = 10 : i32, message = "gqe,gke->gqk"}> : () -> ()
    %cst_64 = arith.constant dense<0.000000e+00> : vector<8x8x8xf32>
    %140 = tpu.matmul %127, %133, %cst_64 {dimension_numbers = #tpu.dot_dimension_numbers<[2], [2], [1], [1], [0, 0, 0, 1, 1, 1], [0], [0]>} : vector<8x8x32xbf16>, vector<8x8x32xbf16>, vector<8x8x8xf32> -> vector<8x8x8xf32>
    "tpu.trace_stop"() : () -> ()
    %141 = arith.addf %140, %1 : vector<8x8x8xf32>
    %cst_65 = arith.constant dense<0xFF800000> : vector<8x8xf32>
    %142 = vector.multi_reduction <maximumf>, %141, %cst_65 [2] : vector<8x8x8xf32> to vector<8x8xf32>
    %143 = vector.shape_cast %142 : vector<8x8xf32> to vector<8x8x1xf32>
    %144 = vector.broadcast %143 : vector<8x8x1xf32> to vector<8x8x8xf32>
    %145 = arith.subf %141, %144 : vector<8x8x8xf32>
    %146 = math.exp %145 : vector<8x8x8xf32>
    %cst_66 = arith.constant dense<0.000000e+00> : vector<8x8xf32>
    %147 = vector.multi_reduction <add>, %146, %cst_66 [2] : vector<8x8x8xf32> to vector<8x8xf32>
    %148 = vector.shape_cast %147 : vector<8x8xf32> to vector<8x8x1xf32>
    %149 = tpu.reciprocal %148 {approx = true} : vector<8x8x1xf32> -> vector<8x8x1xf32>
    %150 = vector.broadcast %149 : vector<8x8x1xf32> to vector<8x8x8xf32>
    %151 = arith.mulf %146, %150 : vector<8x8x8xf32>
    %152 = arith.truncf %151 : vector<8x8x8xf32> to vector<8x8x8xbf16>
    "tpu.trace_start"() <{level = 10 : i32, message = "gqk,gke->gqe"}> : () -> ()
    %cst_67 = arith.constant dense<0.000000e+00> : vector<8x8x32xf32>
    %153 = tpu.matmul %152, %139, %cst_67 {dimension_numbers = #tpu.dot_dimension_numbers<[2], [1], [1], [2], [0, 0, 0, 1, 1, 2], [0], [0]>} : vector<8x8x8xbf16>, vector<8x8x32xbf16>, vector<8x8x32xf32> -> vector<8x8x32xf32>
    "tpu.trace_stop"() : () -> ()
    %154 = vector.shape_cast %153 : vector<8x8x32xf32> to vector<2x4x8x32xf32>
    %cst_68 = arith.constant dense<0.000000e+00> : vector<2x8x32xf32>
    %155 = vector.multi_reduction <add>, %154, %cst_68 [1] : vector<2x4x8x32xf32> to vector<2x8x32xf32>
    %156 = vector.shape_cast %155 : vector<2x8x32xf32> to vector<16x32xf32>
    %157 = arith.truncf %156 : vector<16x32xf32> to vector<16x32xbf16>
    %c1_69 = arith.constant 1 : index
    %c0_70 = arith.constant 0 : index
    %c0_71 = arith.constant 0 : index
    %158 = vector.load %arg7[%c1_69, %c0_70, %c0_71] : memref<2x32x32xbf16, #tpu.memory_space<vmem>>, vector<1x32x32xbf16>
    %159 = vector.shape_cast %158 : vector<1x32x32xbf16> to vector<32x32xbf16>
    %cst_72 = arith.constant dense<0.000000e+00> : vector<16x32xf32>
    %160 = tpu.matmul %157, %159, %cst_72 {dimension_numbers = #tpu.dot_dimension_numbers<[1], [0], [0], [1], [0, 0, 1, 1], [], []>} : vector<16x32xbf16>, vector<32x32xbf16>, vector<16x32xf32> -> vector<16x32xf32>
    %161 = vector.shape_cast %160 : vector<16x32xf32> to vector<2x8x32xf32>
    %162 = arith.addf %96, %161 : vector<2x8x32xf32>
    %c1_73 = arith.constant 1 : index
    %c0_74 = arith.constant 0 : index
    %163 = vector.load %arg8[%c1_73, %c0_74] : memref<2x32xf32, #tpu.memory_space<vmem>>, vector<1x32xf32>
    %164 = vector.shape_cast %163 : vector<1x32xf32> to vector<32xf32>
    %165 = arith.mulf %162, %162 : vector<2x8x32xf32>
    %cst_75 = arith.constant dense<0.000000e+00> : vector<2x8xf32>
    %166 = vector.multi_reduction <add>, %165, %cst_75 [2] : vector<2x8x32xf32> to vector<2x8xf32>
    %167 = vector.shape_cast %166 : vector<2x8xf32> to vector<2x8x1xf32>
    %cst_76 = arith.constant 3.200000e+01 : f32
    %168 = vector.broadcast %cst_76 : f32 to vector<2x8x1xf32>
    %169 = arith.divf %167, %168 : vector<2x8x1xf32>
    %cst_77 = arith.constant 9.99999997E-7 : f32
    %170 = vector.broadcast %cst_77 : f32 to vector<2x8x1xf32>
    %171 = arith.addf %169, %170 : vector<2x8x1xf32>
    %172 = math.rsqrt %171 : vector<2x8x1xf32>
    %173 = vector.broadcast %172 : vector<2x8x1xf32> to vector<2x8x32xf32>
    %174 = arith.mulf %162, %173 : vector<2x8x32xf32>
    %175 = vector.shape_cast %164 : vector<32xf32> to vector<1x1x32xf32>
    %176 = vector.broadcast %175 : vector<1x1x32xf32> to vector<2x8x32xf32>
    %177 = arith.mulf %174, %176 : vector<2x8x32xf32>
    %178 = vector.shape_cast %177 : vector<2x8x32xf32> to vector<16x32xf32>
    %179 = arith.truncf %178 : vector<16x32xf32> to vector<16x32xbf16>
    %c1_78 = arith.constant 1 : index
    %c0_79 = arith.constant 0 : index
    %c0_80 = arith.constant 0 : index
    %180 = vector.load %arg9[%c1_78, %c0_79, %c0_80] : memref<2x32x64xbf16, #tpu.memory_space<vmem>>, vector<1x32x64xbf16>
    %181 = vector.shape_cast %180 : vector<1x32x64xbf16> to vector<32x64xbf16>
    %cst_81 = arith.constant dense<0.000000e+00> : vector<16x64xf32>
    %182 = tpu.matmul %179, %181, %cst_81 {dimension_numbers = #tpu.dot_dimension_numbers<[1], [0], [0], [1], [0, 0, 1, 1], [], []>} : vector<16x32xbf16>, vector<32x64xbf16>, vector<16x64xf32> -> vector<16x64xf32>
    %cst_82 = arith.constant 0.000000e+00 : f32
    %183 = vector.broadcast %cst_82 : f32 to vector<16x64xf32>
    %184 = arith.maximumf %182, %183 : vector<16x64xf32>
    %185 = arith.truncf %184 : vector<16x64xf32> to vector<16x64xbf16>
    %c1_83 = arith.constant 1 : index
    %c0_84 = arith.constant 0 : index
    %c0_85 = arith.constant 0 : index
    %186 = vector.load %arg10[%c1_83, %c0_84, %c0_85] : memref<2x64x32xbf16, #tpu.memory_space<vmem>>, vector<1x64x32xbf16>
    %187 = vector.shape_cast %186 : vector<1x64x32xbf16> to vector<64x32xbf16>
    %cst_86 = arith.constant dense<0.000000e+00> : vector<16x32xf32>
    %188 = tpu.matmul %185, %187, %cst_86 {dimension_numbers = #tpu.dot_dimension_numbers<[1], [0], [0], [1], [0, 0, 1, 1], [], []>} : vector<16x64xbf16>, vector<64x32xbf16>, vector<16x32xf32> -> vector<16x32xf32>
    %189 = vector.shape_cast %188 : vector<16x32xf32> to vector<2x8x32xf32>
    %190 = arith.addf %162, %189 : vector<2x8x32xf32>
    %191 = vector.extract_strided_slice %190 {offsets = [0, 0, 0], sizes = [2, 1, 32], strides = [1, 1, 1]} : vector<2x8x32xf32> to vector<2x1x32xf32>
    %192 = vector.shape_cast %191 : vector<2x1x32xf32> to vector<2x32xf32>
    %c0_87 = arith.constant 0 : index
    %c0_88 = arith.constant 0 : index
    %193 = vector.load %arg11[%c0_87, %c0_88] : memref<1x32xf32, #tpu.memory_space<vmem>>, vector<1x32xf32>
    %194 = vector.shape_cast %193 : vector<1x32xf32> to vector<32xf32>
    %195 = arith.mulf %192, %192 : vector<2x32xf32>
    %cst_89 = arith.constant dense<0.000000e+00> : vector<2xf32>
    %196 = vector.multi_reduction <add>, %195, %cst_89 [1] : vector<2x32xf32> to vector<2xf32>
    %197 = vector.shape_cast %196 : vector<2xf32> to vector<2x1xf32>
    %cst_90 = arith.constant 3.200000e+01 : f32
    %198 = vector.broadcast %cst_90 : f32 to vector<2x1xf32>
    %199 = arith.divf %197, %198 : vector<2x1xf32>
    %cst_91 = arith.constant 9.99999997E-7 : f32
    %200 = vector.broadcast %cst_91 : f32 to vector<2x1xf32>
    %201 = arith.addf %199, %200 : vector<2x1xf32>
    %202 = math.rsqrt %201 : vector<2x1xf32>
    %203 = vector.broadcast %202 : vector<2x1xf32> to vector<2x32xf32>
    %204 = arith.mulf %192, %203 : vector<2x32xf32>
    %205 = vector.shape_cast %194 : vector<32xf32> to vector<1x32xf32>
    %206 = vector.broadcast %205 : vector<1x32xf32> to vector<2x32xf32>
    %207 = arith.mulf %204, %206 : vector<2x32xf32>
    %208 = arith.truncf %207 : vector<2x32xf32> to vector<2x32xbf16>
    %c0_92 = arith.constant 0 : index
    %c0_93 = arith.constant 0 : index
    %209 = vector.load %arg12[%c0_92, %c0_93] : memref<32x128xbf16, #tpu.memory_space<vmem>>, vector<32x128xbf16>
    %cst_94 = arith.constant dense<0.000000e+00> : vector<2x128xf32>
    %210 = tpu.matmul %208, %209, %cst_94 {dimension_numbers = #tpu.dot_dimension_numbers<[1], [0], [0], [1], [0, 0, 1, 1], [], []>} : vector<2x32xbf16>, vector<32x128xbf16>, vector<2x128xf32> -> vector<2x128xf32>
    %c0_95 = arith.constant 0 : index
    %c0_96 = arith.constant 0 : index
    %211 = vector.load %arg13[%c0_95, %c0_96] : memref<1x128xf32, #tpu.memory_space<vmem>>, vector<1x128xf32>
    %212 = vector.broadcast %211 : vector<1x128xf32> to vector<2x128xf32>
    %213 = arith.addf %210, %212 : vector<2x128xf32>
    %c0_97 = arith.constant 0 : index
    %c0_98 = arith.constant 0 : index
    %214 = vector.load %arg14[%c0_97, %c0_98] : memref<2x128xf32, #tpu.memory_space<vmem>>, vector<2x128xf32>
    tpu.vector_store %arg14[%c0_97, %c0_98], %213 {strides = array<i32>} : memref<2x128xf32, #tpu.memory_space<vmem>>, vector<2x128xf32>,
    return
  }
}

</mosaic_0001>

<bundles_post_ra>
// kernel: tpu_custom_call.1
= control target key start
LH: loop header
LB: loop body
LE: loop exit
PB: predicated region body
PF: predicated region fallthrough
CT: control target
= control target key end

     0   :  { %19 = vsyncpa [#allocation3], 0  ;;  %s4412_s0 = inlined_call_operand.hbm [shape: f32[2,8,32], index: 0, kind: input, shape index: {}]   ;;  %s4413_s1 = inlined_call_operand.vmem [shape: f32[8,8,8], index: 1, kind: input, shape index: {}]   ;;  %s4414_s2 = inlined_call_operand.vmem [shape: bf16[1,4,1,32], index: 2, kind: input, shape index: {}]   ;;  %s4415_s3 = inlined_call_operand.vmem [shape: f32[2,32], index: 3, kind: input, shape index: {}]   ;;  %s4416_s4 = inlined_call_operand.vmem [shape: bf16[2,32,32], index: 4, kind: input, shape index: {}]   ;;  %s4417_s5 = inlined_call_operand.hbm [shape: bf16[2,32,32], index: 5, kind: input, shape index: {}]   ;;  %s4418_s6 = inlined_call_operand.hbm [shape: bf16[2,32,32], index: 6, kind: input, shape index: {}]   ;;  %s4419_s7 = inlined_call_operand.hbm [shape: bf16[2,32,32], index: 7, kind: input, shape index: {}]   ;;  %s4420_s8 = inlined_call_operand.hbm [shape: f32[2,32], index: 8, kind: input, shape index: {}]   ;;  %s4421_s9 = inlined_call_operand.hbm [shape: bf16[2,32,64], index: 9, kind: input, shape index: {}]   ;;  %s4422_s10 = inlined_call_operand.vmem [shape: bf16[2,64,32], index: 10, kind: input, shape index: {}]   ;;  %s4423_s11 = inlined_call_operand.vmem [shape: f32[1,32], index: 11, kind: input, shape index: {}]   ;;  %s4424_s12 = inlined_call_operand.vmem [shape: bf16[32,128], index: 12, kind: input, shape index: {}]   ;;  %s4425_s13 = inlined_call_operand.vmem [shape: f32[1,128], index: 13, kind: input, shape index: {}]   ;;  %s4426_s14 = inlined_call_operand.hbm [shape: f32[2,128], index: 14, kind: output, shape index: {}]  }
   0x1   :  { %20 = vsyncpa [#allocation6], 0 }
   0x2   :  { %21 = vsyncpa [#allocation9], 0 }
   0x3   :  { %22 = vsyncpa [#allocation12], 0 }
   0x4   :  { %23 = vsyncpa [#allocation4], 0  ;;  %s3707_s29 = smov [#allocation5]   ;;  %s3543_s17 = scalar_lea.hbm %s4417_s5, 512 }
   0x5   :  { %s49_s30 = sshll.u32 %s3707_s29, 4  ;;  %p3544_p0 = scmp.ne.s32.totalorder %s4417_s5, %s3543_s17  ;;  %s50_s30 = int_to_ptr.vmem [resolvable:$true] %s49_s30 }
   0x6   :  { %p3547_p1 = scmp.lt.u32.totalorder %s3543_s17, %s4417_s5 }
   0x8   :  { %p3549_p2 = pnand %p3547_p1, %p3544_p0 }
   0xa   :  { %3552 = shalt.err (!%p3549_p2)
}
   0xb   :  { %s3553_s22 = scalar_lea.vmem %s50_s30, 512  ;;  %p3558_p4 = scmp.lt.s32.totalorder %s50_s30, %s50_s30 }
   0xc   :  { %p3554_p3 = scmp.ne.s32.totalorder %s50_s30, %s3553_s22  ;;  %p3559_p5 = scmp.lt.s32.totalorder %s3553_s22, %s3553_s22 }
   0xe   :  { %p3560_p6 = por %p3559_p5, %p3558_p4 }
  0x10   :  { %p3561_p7 = pnand %p3560_p6, %p3554_p3 }
  0x12   :  { %3564 = shalt.err (!%p3561_p7)
}
  0x13   :  { %s3708_s23 = smov 64   ;;  %s3709_s24 = smov 4  }
  0x14   :  { %55 = dma.hbm_to_vmem [thread:$0]  %s4417_s5, 512, %s50_s30, [#allocation6], %s3708_s23, %s3708_s23, %s3709_s24  }
  0x15   :  { %s3710_s27 = smov [#allocation8]   ;;  %s3711_s29 = smov [#allocation2]  }
  0x16   :  { %s73_s28 = sshll.u32 %s3710_s27, 4  ;;  %s29_s15 = sshll.u32 %s3711_s29, 4  ;;  %s74_s28 = int_to_ptr.vmem [resolvable:$true] %s73_s28  ;;  %s30_s15 = int_to_ptr.vmem [resolvable:$true] %s29_s15 }
  0x17   :  { %s3565_s18 = scalar_lea.hbm %s4419_s7, 512 }
  0x18   :  { %p3566_p8 = scmp.ne.s32.totalorder %s4419_s7, %s3565_s18  ;;  %p3569_p9 = scmp.lt.u32.totalorder %s3565_s18, %s4419_s7 }
  0x1a   :  { %p3571_p10 = pnand %p3569_p9, %p3566_p8 }
  0x1c   :  { %3574 = shalt.err (!%p3571_p10)
}
  0x1d   :  { %s3575_s5 = scalar_lea.vmem %s74_s28, 512  ;;  %p3580_p12 = scmp.lt.s32.totalorder %s74_s28, %s74_s28 }
  0x1e   :  { %p3576_p11 = scmp.ne.s32.totalorder %s74_s28, %s3575_s5  ;;  %p3581_p13 = scmp.lt.s32.totalorder %s3575_s5, %s3575_s5 }
  0x20   :  { %p3582_p0 = por %p3581_p13, %p3580_p12 }
  0x22   :  { %p3583_p1 = pnand %p3582_p0, %p3576_p11 }
  0x24   :  { %3586 = shalt.err (!%p3583_p1)
}
  0x25   :  { %79 = dma.hbm_to_vmem [thread:$0]  %s4419_s7, 512, %s74_s28, [#allocation9], %s3708_s23, %s3708_s23, %s3709_s24  }
  0x26   :  { %s3587_s29 = scalar_lea.hbm %s4412_s0, 256 }
  0x27   :  { %p3588_p2 = scmp.ne.s32.totalorder %s4412_s0, %s3587_s29  ;;  %p3591_p3 = scmp.lt.u32.totalorder %s3587_s29, %s4412_s0 }
  0x29   :  { %p3593_p4 = pnand %p3591_p3, %p3588_p2 }
  0x2b   :  { %3596 = shalt.err (!%p3593_p4)
}
  0x2c   :  { %s3597_s20 = scalar_lea.vmem %s30_s15, 256  ;;  %p3602_p6 = scmp.lt.s32.totalorder %s30_s15, %s30_s15 }
  0x2d   :  { %p3598_p5 = scmp.ne.s32.totalorder %s30_s15, %s3597_s20  ;;  %p3603_p7 = scmp.lt.s32.totalorder %s3597_s20, %s3597_s20 }
  0x2f   :  { %p3604_p8 = por %p3603_p7, %p3602_p6 }
  0x31   :  { %p3605_p9 = pnand %p3604_p8, %p3598_p5 }
  0x33   :  { %3608 = shalt.err (!%p3605_p9)
}
  0x34   :  { %s3712_s7 = smov 128   ;;  %s3713_s28 = smov 8  }
  0x35   :  { %35 = dma.hbm_to_vmem [thread:$0]  %s4412_s0, 256, %s30_s15, [#allocation3], %s3712_s7, %s3712_s7, %s3713_s28  }
  0x36   :  { %s3714_s5 = smov [#allocation7]   ;;  %s3715_s25 = smov [#allocation10]  }
  0x37   :  { %s61_s30 = sshll.u32 %s3714_s5, 4  ;;  %s86_s26 = sshll.u32 %s3715_s25, 4  ;;  %s62_s30 = int_to_ptr.vmem [resolvable:$true] %s61_s30  ;;  %s87_s26 = int_to_ptr.vmem [resolvable:$true] %s86_s26 }
  0x38   :  { %s3609_s16 = scalar_lea.hbm %s4418_s6, 512 }
  0x39   :  { %p3610_p10 = scmp.ne.s32.totalorder %s4418_s6, %s3609_s16  ;;  %p3613_p11 = scmp.lt.u32.totalorder %s3609_s16, %s4418_s6 }
  0x3b   :  { %p3615_p12 = pnand %p3613_p11, %p3610_p10 }
  0x3d   :  { %3618 = shalt.err (!%p3615_p12)
}
  0x3e   :  { %s3619_s0 = scalar_lea.vmem %s62_s30, 512  ;;  %p3624_p0 = scmp.lt.s32.totalorder %s62_s30, %s62_s30 }
  0x3f   :  { %p3620_p13 = scmp.ne.s32.totalorder %s62_s30, %s3619_s0  ;;  %p3625_p1 = scmp.lt.s32.totalorder %s3619_s0, %s3619_s0 }
  0x41   :  { %p3626_p2 = por %p3625_p1, %p3624_p0 }
  0x43   :  { %p3627_p3 = pnand %p3626_p2, %p3620_p13 }
  0x45   :  { %3630 = shalt.err (!%p3627_p3)
}
  0x46   :  { %67 = dma.hbm_to_vmem [thread:$0]  %s4418_s6, 512, %s62_s30, [#allocation6], %s3708_s23, %s3708_s23, %s3709_s24  }
  0x47   :  { %s3631_s22 = scalar_lea.hbm %s4420_s8, 32 }
  0x48   :  { %p3632_p4 = scmp.ne.s32.totalorder %s4420_s8, %s3631_s22  ;;  %p3635_p5 = scmp.lt.u32.totalorder %s3631_s22, %s4420_s8 }
  0x4a   :  { %p3637_p6 = pnand %p3635_p5, %p3632_p4 }
  0x4c   :  { %3640 = shalt.err (!%p3637_p6)
}
  0x4d   :  { %s3641_s16 = scalar_lea.vmem %s87_s26, 32  ;;  %p3646_p8 = scmp.lt.s32.totalorder %s87_s26, %s87_s26 }
  0x4e   :  { %p3642_p7 = scmp.ne.s32.totalorder %s87_s26, %s3641_s16  ;;  %p3647_p9 = scmp.lt.s32.totalorder %s3641_s16, %s3641_s16 }
  0x50   :  { %p3648_p10 = por %p3647_p9, %p3646_p8 }
  0x52   :  { %p3649_p11 = pnand %p3648_p10, %p3642_p7 }
  0x54   :  { %3652 = shalt.err (!%p3649_p11)
}
  0x55   :  { %89 = dma.hbm_to_vmem [thread:$0]  %s4420_s8, 32, %s87_s26, [#allocation9]  }
  0x56   :  { %s3716_s17 = smov [#allocation11]   ;;  %s3653_s0 = scalar_lea.hbm %s4421_s9, 512 }
  0x57   :  { %s95_s18 = sshll.u32 %s3716_s17, 4  ;;  %p3654_p12 = scmp.ne.s32.totalorder %s4421_s9, %s3653_s0  ;;  %s96_s18 = int_to_ptr.vmem [resolvable:$true] %s95_s18 }
  0x58   :  { %p3657_p13 = scmp.lt.u32.totalorder %s3653_s0, %s4421_s9 }
  0x5a   :  { %p3659_p0 = pnand %p3657_p13, %p3654_p12 }
  0x5c   :  { %3662 = shalt.err (!%p3659_p0)
}
  0x5d   :  { %s3663_s22 = scalar_lea.vmem %s96_s18, 512  ;;  %p3668_p2 = scmp.lt.s32.totalorder %s96_s18, %s96_s18 }
  0x5e   :  { %p3664_p1 = scmp.ne.s32.totalorder %s96_s18, %s3663_s22  ;;  %p3669_p3 = scmp.lt.s32.totalorder %s3663_s22, %s3663_s22 }
  0x60   :  { %p3670_p4 = por %p3669_p3, %p3668_p2 }
  0x62   :  { %p3671_p5 = pnand %p3670_p4, %p3664_p1 }
  0x64   :  { %3674 = shalt.err (!%p3671_p5)
}
  0x65   :  { %101 = dma.hbm_to_vmem [thread:$0]  %s4421_s9, 512, %s96_s18, [#allocation12], %s3708_s23, %s3708_s23, %s3709_s24  }
  0x66   :  { %3697 = dma.done.wait [#allocation3], 256  }
  0x67   :  { %3698 = vsyncadd [#allocation3], 4294967040 }
  0x68   :  { %3699 = dma.done.wait [#allocation6], 1024  }
  0x69   :  { %3700 = vsyncadd [#allocation6], 4294966272 }
  0x6a   :  { %3701 = dma.done.wait [#allocation9], 544  }
  0x6b   :  { %3702 = vsyncadd [#allocation9], 4294966752 }
  0x6c   :  { %3703 = dma.done.wait [#allocation12], 512  }
  0x6d   :  { %3704 = vsyncadd [#allocation12], 4294966784  ;;  %v3879_v0 = vld [vmem:[#allocation2] sm:$0xff]  ;;  %vm146_vm0 = vcmask 261120   ;;  %v3881_v1 = vld [vmem:[#allocation2 + $0x8] sm:$0xff]  ;;  %v3717_v8 = vmov 0.0   ;;  %v360_v27 = vlaneseq }
  0x6e   :  { %v144_v2 = vmul.f32 %v3879_v0, %v3879_v0  ;;  %v145_v3 = vmul.f32 %v3881_v1, %v3881_v1  ;;  %v3431_v6 = vld [vmem:[%s4416_s4] sm:$0xff]   ;;  %v3432_v7 = vld [vmem:[#allocation5] sm:$0xff]   ;;  %3114 = vmatprep.subr.bf16.mxu0 %v3717_v8  ;;  %3122 = vmatprep.subr.bf16.mxu1 %v3717_v8  ;;  %v3433_v9 = vld [vmem:[%s4416_s4 + $0x8] sm:$0xff]   ;;  %vm3718_vm1 = vmmov 0   ;;  %vm859_vm2 = vcmask 1043456  }
  0x6f   :  { %3115 = vmatpush3.bf16.msra.mxu0 %v3431_v6  ;;  %3123 = vmatpush3.bf16.msra.mxu1 %v3432_v7  ;;  %v3434_v10 = vld [vmem:[#allocation5 + $0x8] sm:$0xff]   ;;  %v2890_v20 = vld [vmem:[%s4415_s3] ss:$0 sm:$0xff]  ;;  %v3435_v24 = vld [vmem:[#allocation7] sm:$0xff]   ;;  %v361_v28 = vshrl.u32 %v360_v27, 7  ;;  %vm759_vm3 = vcmask 64512  }
  0x70   :  { %v147_v4 = vsel %vm146_vm0, %v144_v2, 0.0  ;;  %v150_v5 = vsel %vm146_vm0, %v145_v3, 0.0  ;;  %3116 = vmatprep.subr.bf16.mxu0 %v3717_v8  ;;  %3124 = vmatprep.subr.bf16.mxu1 %v3717_v8  ;;  %v3436_v26 = vld [vmem:[#allocation7 + $0x8] sm:$0xff]   ;;  %v139_v29 = vld [vmem:[%s4414_s2] sm:$0x1]  ;;  %vm1421_vm4 = vcmask 523264  }
  0x71   :  { %148 = vadd.xlane.f32.xlu0 %v147_v4  ;;  %3118 = vmatprep.mubr.msk.bf16.mxu0 %vm3718_vm1, %v3717_v8  ;;  %v140_v30 = vld [vmem:[%s4414_s2 + $0x1] sm:$0x1]  ;;  %v358_v31 = vpack.i.b16 %v139_v29, %v139_v29  ;;  %v362_v32 = vsub.s32 0, %v361_v28  ;;  %v141_v34 = vld [vmem:[%s4414_s2 + $0x2] sm:$0x1]  ;;  %vm2772_vm5 = vcmask 1041409  }
  0x72   :  { %3126 = vmatprep.mubr.msk.bf16.mxu1 %vm3718_vm1, %v3717_v8  ;;  %v365_v33 = vpack.i.b16 %v140_v30, %v140_v30  ;;  %v142_v35 = vld [vmem:[%s4414_s2 + $0x3] sm:$0x1]  ;;  %v372_v43 = vpack.i.b16 %v141_v34, %v141_v34  ;;  %vm2775_vm6 = vcmask 254976  }
  0x73   :  { %3117 = vmatpush3.bf16.msra.mxu0 %v3433_v9  ;;  %3125 = vmatpush3.bf16.msra.mxu1 %v3434_v10  ;;  %v3933_v36 = vrot.slane %v358_v31, %v362_v32  ;;  %v379_v44 = vpack.i.b16 %v142_v35, %v142_v35  ;;  %v4017_v31 = vld [vmem:[%s4413_s1 + $0x10] sm:$0xff] }
  0x74   :  { %3130 = vmatprep.subr.bf16.mxu0 %v3717_v8  ;;  %3138 = vmatprep.subr.bf16.mxu1 %v3717_v8  ;;  %v3935_v37 = vrot.slane %v365_v33, %v362_v32  ;;  %v3941_v53 = vrot.slane %v372_v43, %v362_v32 }
  0x75   :  { %151 = vadd.xlane.f32.xlu0 %v150_v5  ;;  %v3943_v54 = vrot.slane %v379_v44, %v362_v32  ;;  %v4022_v32 = vld [vmem:[%s4413_s1 + $0x18] sm:$0xff] }
  0xfe   :  { %v149_v11 = vpop.xlane.xlu0 %148 }
  0xff   :  { %v154_v12 = vmul.f32 0.03125, %v149_v11 }
 0x101   :  { %v156_v13 = vadd.f32 1e-06, %v154_v12 }
 0x102   :  { %v152_v14 = vpop.xlane.xlu0 %151 }
 0x103   :  { %3461 = vrsqrt.f32 %v156_v13  ;;  %v155_v15 = vmul.f32 0.03125, %v152_v14 }
 0x105   :  { %v157_v16 = vadd.f32 1e-06, %v155_v15 }
 0x107   :  { %3463 = vrsqrt.f32 %v157_v16 }
 0x10d   :  { %v3462_v17 = vpop.eup %3461 }
 0x10e   :  { %v160_v18 = vmul.f32 %v3462_v17, %v3879_v0 }
 0x110   :  { %v166_v22 = vmul.f32 %v2890_v20, %v160_v18  ;;  %v4004_v18 = vld [vmem:[%s4413_s1] sm:$0xff] }
 0x111   :  { %v3464_v19 = vpop.eup %3463 }
 0x112   :  { %v161_v21 = vmul.f32 %v3464_v19, %v3881_v1 }
 0x114   :  { %v167_v23 = vmul.f32 %v2890_v20, %v161_v21  ;;  %v4009_v20 = vld [vmem:[%s4413_s1 + $0x8] sm:$0xff] }
 0x116   :  { %v168_v25 = vpack.c.bf16 %v167_v23, %v166_v22 }
 0x118   :  { %3119 = vmatmul.mubr.msk.bf16.vlgmr.msra.gmra.mrb[0].mxu0 %vm146_vm0, %v168_v25  ;;  %3127 = vmatmul.mubr.msk.bf16.vlgmr.msra.gmra.mrb[0].mxu1 %vm146_vm0, %v168_v25 }
 0x119   :  { %3131 = vmatpush3.bf16.msra.mxu0 %v3435_v24  ;;  %3134 = vmatprep.mubr.msk.bf16.mxu0 %vm3718_vm1, %v3717_v8 }
 0x11a   :  { %3132 = vmatprep.subr.bf16.mxu0 %v3717_v8  ;;  %3140 = vmatprep.mubr.msk.bf16.mxu1 %vm3718_vm1, %v3717_v8 }
 0x11d   :  { %3133 = vmatpush3.bf16.msra.mxu0 %v3436_v26 }
 0x11e   :  { %3144 = vmatprep.subr.bf16.mxu0 %v3717_v8 }
 0x120   :  { %3135 = vmatmul.mubr.msk.bf16.vlgmr.msra.gmra.mrb[4].mxu0 %vm146_vm0, %v168_v25 }
 0x121   :  { %3146 = vmatprep.mubr.msk.bf16.mxu0 %vm3718_vm1, %v3717_v8 }
 0x1eb   :  { %v222_v38 = vpop.f32.mrb[0].mxu0  ;;  %v279_v39 = vpop.f32.mrb[0].mxu1 }
 0x1ec   :  { %v2997_v40 = vpack.c.bf16 %v279_v39, %v279_v39  ;;  %v3120_v41 = vpop.f32.mrb[1].mxu0  ;;  %v3128_v42 = vpop.f32.mrb[1].mxu1  ;;  %v2995_v60 = vpack.c.bf16 %v222_v38, %v222_v38 }
 0x1ed   :  { %v225_v45 = vpop.f32.mrb[2].mxu0  ;;  %v282_v46 = vpop.f32.mrb[2].mxu1 }
 0x1ee   :  { %v3121_v47 = vpop.f32.mrb[3].mxu0  ;;  %v3129_v48 = vpop.f32.mrb[3].mxu1  ;;  %v385_v49 = vmul.bf16 %v2997_v40, %v3933_v36  ;;  %v386_v50 = vmul.bf16 %v2997_v40, %v3935_v37  ;;  %v387_v57 = vmul.bf16 %v2997_v40, %v3941_v53  ;;  %v388_v58 = vmul.bf16 %v2997_v40, %v3943_v54 }
 0x1ef   :  { %v2998_v62 = vpack.c.bf16 %v282_v46, %v282_v46  ;;  %v2996_v10 = vpack.c.bf16 %v225_v45, %v225_v45  ;;  %v4032_v48 = vld [vmem:[%s4413_s1 + $0x20] sm:$0xff] }
 0x1f0   :  { %v413_v51 = vsel %vm146_vm0, %v385_v49, 0  ;;  %v456_v52 = vsel %vm146_vm0, %v386_v50, 0  ;;  %v499_v63 = vsel %vm146_vm0, %v387_v57, 0  ;;  %v542_v2 = vsel %vm146_vm0, %v388_v58, 0  ;;  %v4037_v49 = vld [vmem:[%s4413_s1 + $0x28] sm:$0xff] }
 0x1f1   :  { %3139 = vmatpush3.bf16.xpose.msra.mxu1 %v413_v51  ;;  %3145 = vmatpush3.bf16.xpose.msra.mxu0 %v456_v52  ;;  %v389_v3 = vmul.bf16 %v2998_v62, %v3933_v36  ;;  %v390_v4 = vmul.bf16 %v2998_v62, %v3935_v37  ;;  %v391_v7 = vmul.bf16 %v2998_v62, %v3941_v53 }
 0x1f2   :  { %3150 = vmatprep.subr.bf16.mxu1 %v3717_v8  ;;  %3156 = vmatprep.subr.bf16.mxu0 %v3717_v8  ;;  %v392_v9 = vmul.bf16 %v2998_v62, %v3943_v54 }
 0x1f3   :  { %v336_v55 = vpop.f32.mrb[4].mxu0  ;;  %v588_v5 = vsel %vm146_vm0, %v389_v3, 0  ;;  %v631_v6 = vsel %vm146_vm0, %v390_v4, 0  ;;  %v674_v12 = vsel %vm146_vm0, %v391_v7, 0  ;;  %v4046_v3 = vld [vmem:[%s4413_s1 + $0x30] sm:$0xff]  ;;  %v4051_v4 = vld [vmem:[%s4413_s1 + $0x38] sm:$0xff] }
 0x1f4   :  { %v3136_v56 = vpop.f32.mrb[5].mxu0  ;;  %v3975_v11 = vpack.c.bf16 %v336_v55, %v336_v55  ;;  %v717_v13 = vsel %vm146_vm0, %v392_v9, 0 }
 0x1f5   :  { %v3949_v59 = vpop.f32.mrb[6].mxu0 }
 0x1f6   :  { %v3137_v61 = vpop.f32.mrb[7].mxu0  ;;  %v401_v14 = vmul.bf16 %v3975_v11, %v3933_v36  ;;  %v402_v15 = vmul.bf16 %v3975_v11, %v3935_v37 }
 0x1f8   :  { %3141 = vmatmul.mubr.msk.bf16.vlgmr.msra.gmra.mrb[4].mxu1 %vm146_vm0, %v2995_v60  ;;  %3147 = vmatmul.mubr.msk.bf16.vlgmr.msra.gmra.mrb[8].mxu0 %vm146_vm0, %v2995_v60  ;;  %v861_v16 = vsel %vm859_vm2, %v401_v14, 0  ;;  %v907_v17 = vsel %vm859_vm2, %v402_v15, 0 }
 0x1f9   :  { %3151 = vmatpush3.bf16.xpose.msra.mxu1 %v499_v63  ;;  %3157 = vmatpush3.bf16.xpose.msra.mxu0 %v542_v2 }
 0x1fa   :  { %3152 = vmatprep.mubr.msk.bf16.mxu1 %vm3718_vm1, %v3717_v8  ;;  %3158 = vmatprep.mubr.msk.bf16.mxu0 %vm3718_vm1, %v3717_v8 }
 0x1fb   :  { %3162 = vmatprep.subr.bf16.mxu1 %v3717_v8  ;;  %3168 = vmatprep.subr.bf16.mxu0 %v3717_v8 }
 0x200   :  { %3153 = vmatmul.mubr.msk.bf16.vlgmr.msra.gmra.mrb[8].mxu1 %vm146_vm0, %v2995_v60  ;;  %3159 = vmatmul.mubr.msk.bf16.vlgmr.msra.gmra.mrb[12].mxu0 %vm146_vm0, %v2995_v60 }
 0x201   :  { %3163 = vmatpush3.bf16.xpose.msra.mxu1 %v588_v5  ;;  %3169 = vmatpush3.bf16.xpose.msra.mxu0 %v631_v6 }
 0x202   :  { %3164 = vmatprep.mubr.msk.bf16.mxu1 %vm3718_vm1, %v3717_v8  ;;  %3170 = vmatprep.mubr.msk.bf16.mxu0 %vm3718_vm1, %v3717_v8 }
 0x203   :  { %3174 = vmatprep.subr.bf16.mxu1 %v3717_v8  ;;  %3180 = vmatprep.subr.bf16.mxu0 %v3717_v8 }
 0x208   :  { %3165 = vmatmul.mubr.msk.bf16.vlgmr.msra.gmra.mrb[12].mxu1 %vm146_vm0, %v2996_v10  ;;  %3171 = vmatmul.mubr.msk.bf16.vlgmr.msra.gmra.mrb[16].mxu0 %vm146_vm0, %v2996_v10 }
 0x209   :  { %3175 = vmatpush3.bf16.xpose.msra.mxu1 %v674_v12  ;;  %3181 = vmatpush3.bf16.xpose.msra.mxu0 %v717_v13 }
 0x20a   :  { %3176 = vmatprep.mubr.msk.bf16.mxu1 %vm3718_vm1, %v3717_v8  ;;  %3182 = vmatprep.mubr.msk.bf16.mxu0 %vm3718_vm1, %v3717_v8 }
 0x20b   :  { %3186 = vmatprep.subr.bf16.mxu1 %v3717_v8  ;;  %3192 = vmatprep.subr.bf16.mxu0 %v3717_v8 }
 0x210   :  { %3177 = vmatmul.mubr.msk.bf16.vlgmr.msra.gmra.mrb[16].mxu1 %vm146_vm0, %v2996_v10  ;;  %3183 = vmatmul.mubr.msk.bf16.vlgmr.msra.gmra.mrb[20].mxu0 %vm146_vm0, %v2996_v10 }
 0x211   :  { %3187 = vmatpush3.bf16.msra.mxu1 %v861_v16  ;;  %3193 = vmatpush3.bf16.msra.mxu0 %v907_v17 }
 0x212   :  { %3188 = vmatprep.mubr.msk.bf16.mxu1 %vm3718_vm1, %v3717_v8  ;;  %3198 = vmatprep.subr.bf16.mxu1 %v3717_v8 }
 0x213   :  { %3194 = vmatprep.mubr.msk.bf16.mxu0 %vm3718_vm1, %v3717_v8  ;;  %3204 = vmatprep.subr.bf16.mxu0 %v3717_v8 }
 0x2cb   :  { %v449_v19 = vpop.f32.mrb[4].mxu1  ;;  %v492_v21 = vpop.f32.mrb[8].mxu0 }
 0x2cc   :  { %v450_v22 = vadd.f32 %v449_v19, %v4004_v18  ;;  %v3142_v23 = vpop.f32.mrb[5].mxu1  ;;  %v3148_v24 = vpop.f32.mrb[9].mxu0  ;;  %v493_v27 = vadd.f32 %v492_v21, %v4009_v20 }
 0x2cd   :  { %v452_v25 = vpop.f32.mrb[6].mxu1  ;;  %v495_v26 = vpop.f32.mrb[10].mxu0 }
 0x2ce   :  { %v3143_v28 = vpop.f32.mrb[7].mxu1  ;;  %v3149_v29 = vpop.f32.mrb[11].mxu0  ;;  %v760_v30 = vsel %vm759_vm3, %v450_v22, -inf  ;;  %v763_v33 = vsel %vm759_vm3, %v493_v27, -inf }
 0x2cf   :  { %761 = vmax.xlane.f32.xlu1 %v760_v30 }
 0x2d3   :  { %v535_v34 = vpop.f32.mrb[8].mxu1  ;;  %764 = vmax.xlane.f32.xlu1 %v763_v33  ;;  %v578_v35 = vpop.f32.mrb[12].mxu0 }
 0x2d4   :  { %v536_v38 = vadd.f32 %v535_v34, %v4017_v31  ;;  %v579_v39 = vadd.f32 %v578_v35, %v4022_v32  ;;  %v3154_v40 = vpop.f32.mrb[9].mxu1  ;;  %v3160_v41 = vpop.f32.mrb[13].mxu0 }
 0x2d5   :  { %v538_v42 = vpop.f32.mrb[10].mxu1  ;;  %v581_v43 = vpop.f32.mrb[14].mxu0 }
 0x2d6   :  { %v3155_v44 = vpop.f32.mrb[11].mxu1  ;;  %v3161_v45 = vpop.f32.mrb[15].mxu0  ;;  %v766_v46 = vsel %vm759_vm3, %v536_v38, -inf  ;;  %v769_v47 = vsel %vm759_vm3, %v579_v39, -inf }
 0x2d7   :  { %767 = vmax.xlane.f32.xlu0 %v766_v46  ;;  %770 = vmax.xlane.f32.xlu1 %v769_v47 }
 0x2db   :  { %v624_v50 = vpop.f32.mrb[12].mxu1  ;;  %v667_v51 = vpop.f32.mrb[16].mxu0 }
 0x2dc   :  { %v625_v52 = vadd.f32 %v624_v50, %v4032_v48  ;;  %v668_v55 = vadd.f32 %v667_v51, %v4037_v49  ;;  %v3166_v56 = vpop.f32.mrb[13].mxu1  ;;  %v3172_v57 = vpop.f32.mrb[17].mxu0 }
 0x2dd   :  { %v627_v58 = vpop.f32.mrb[14].mxu1  ;;  %v670_v60 = vpop.f32.mrb[18].mxu0 }
 0x2de   :  { %v3167_v61 = vpop.f32.mrb[15].mxu1  ;;  %v3173_v62 = vpop.f32.mrb[19].mxu0  ;;  %v772_v63 = vsel %vm759_vm3, %v625_v52, -inf  ;;  %v775_v2 = vsel %vm759_vm3, %v668_v55, -inf }
 0x2df   :  { %773 = vmax.xlane.f32.xlu0 %v772_v63  ;;  %776 = vmax.xlane.f32.xlu1 %v775_v2 }
 0x2e3   :  { %v710_v5 = vpop.f32.mrb[16].mxu1  ;;  %v753_v6 = vpop.f32.mrb[20].mxu0 }
 0x2e4   :  { %v711_v7 = vadd.f32 %v710_v5, %v4046_v3  ;;  %v754_v9 = vadd.f32 %v753_v6, %v4051_v4  ;;  %v3178_v10 = vpop.f32.mrb[17].mxu1  ;;  %v3184_v12 = vpop.f32.mrb[21].mxu0 }
 0x2e5   :  { %v713_v13 = vpop.f32.mrb[18].mxu1  ;;  %v756_v14 = vpop.f32.mrb[22].mxu0 }
 0x2e6   :  { %v3179_v15 = vpop.f32.mrb[19].mxu1  ;;  %v3185_v16 = vpop.f32.mrb[23].mxu0  ;;  %v778_v17 = vsel %vm759_vm3, %v711_v7, -inf  ;;  %v781_v19 = vsel %vm759_vm3, %v754_v9, -inf }
 0x2e7   :  { %779 = vmax.xlane.f32.xlu0 %v778_v17  ;;  %782 = vmax.xlane.f32.xlu1 %v781_v19  ;;  %v403_v19 = vmul.bf16 %v3975_v11, %v3941_v53 }
 0x35c   :  { %v762_v21 = vpop.xlane.xlu1 %761 }
 0x35d   :  { %v784_v23 = vsub.f32 %v450_v22, %v762_v21 }
 0x35f   :  { %v792_v24 = vmul.f32 1.442695, %v784_v23 }
 0x360   :  { %v765_v25 = vpop.xlane.xlu1 %764 }
 0x361   :  { %3465 = vpow2.f32 %v792_v24  ;;  %v785_v26 = vsub.f32 %v493_v27, %v765_v25  ;;  %v3000_v24 = vpack.c.bf16 %v3949_v59, %v3949_v59 }
 0x363   :  { %v794_v28 = vmul.f32 1.442695, %v785_v26 }
 0x364   :  { %v768_v29 = vpop.xlane.xlu0 %767  ;;  %v771_v30 = vpop.xlane.xlu1 %770 }
 0x365   :  { %3467 = vpow2.f32 %v794_v28  ;;  %v786_v33 = vsub.f32 %v536_v38, %v768_v29  ;;  %v787_v34 = vsub.f32 %v579_v39, %v771_v30  ;;  %v953_v28 = vsel %vm859_vm2, %v403_v19, 0 }
 0x366   :  { %v404_v29 = vmul.bf16 %v3975_v11, %v3943_v54 }
 0x367   :  { %v796_v35 = vmul.f32 1.442695, %v786_v33  ;;  %v798_v40 = vmul.f32 1.442695, %v787_v34 }
 0x369   :  { %3469 = vpow2.f32 %v796_v35 }
 0x36a   :  { %3471 = vpow2.f32 %v798_v40  ;;  %v999_v40 = vsel %vm859_vm2, %v404_v29, 0 }
 0x36b   :  { %v3466_v41 = vpop.eup %3465 }
 0x36c   :  { %v774_v42 = vpop.xlane.xlu0 %773  ;;  %v777_v43 = vpop.xlane.xlu1 %776  ;;  %v808_v44 = vsel %vm759_vm3, %v3466_v41, 0.0 }
 0x36d   :  { %v788_v22 = vsub.f32 %v625_v52, %v774_v42  ;;  %v789_v45 = vsub.f32 %v668_v55, %v777_v43  ;;  %809 = vadd.xlane.f32.xlu0 %v808_v44 }
 0x36f   :  { %v3468_v46 = vpop.eup %3467  ;;  %v800_v27 = vmul.f32 1.442695, %v788_v22  ;;  %v802_v47 = vmul.f32 1.442695, %v789_v45  ;;  %v406_v22 = vmul.bf16 %v3000_v24, %v3935_v37 }
 0x370   :  { %v811_v50 = vsel %vm759_vm3, %v3468_v46, 0.0 }
 0x371   :  { %3473 = vpow2.f32 %v800_v27  ;;  %812 = vadd.xlane.f32.xlu1 %v811_v50 }
 0x372   :  { %3475 = vpow2.f32 %v802_v47 }
 0x373   :  { %v3470_v38 = vpop.eup %3469 }
 0x374   :  { %v3472_v39 = vpop.eup %3471  ;;  %v780_v51 = vpop.xlane.xlu0 %779  ;;  %v814_v57 = vsel %vm759_vm3, %v3470_v38, 0.0 }
 0x375   :  { %v783_v56 = vpop.xlane.xlu1 %782  ;;  %v790_v58 = vsub.f32 %v711_v7, %v780_v51  ;;  %815 = vadd.xlane.f32.xlu0 %v814_v57  ;;  %v817_v52 = vsel %vm759_vm3, %v3472_v39, 0.0 }
 0x376   :  { %v791_v60 = vsub.f32 %v754_v9, %v783_v56  ;;  %818 = vadd.xlane.f32.xlu1 %v817_v52 }
 0x377   :  { %v804_v55 = vmul.f32 1.442695, %v790_v58  ;;  %v408_v58 = vmul.bf16 %v3000_v24, %v3943_v54 }
 0x378   :  { %v806_v61 = vmul.f32 1.442695, %v791_v60 }
 0x379   :  { %3477 = vpow2.f32 %v804_v55 }
 0x37a   :  { %3479 = vpow2.f32 %v806_v61 }
 0x37b   :  { %v3474_v62 = vpop.eup %3473 }
 0x37c   :  { %v4061_v63 = vpop.eup %3475  ;;  %v820_v2 = vsel %vm759_vm3, %v3474_v62, 0.0 }
 0x37d   :  { %821 = vadd.xlane.f32.xlu0 %v820_v2  ;;  %v823_v5 = vsel %vm759_vm3, %v4061_v63, 0.0 }
 0x37e   :  { %824 = vadd.xlane.f32.xlu1 %v823_v5 }
 0x383   :  { %v4066_v6 = vpop.eup %3477 }
 0x384   :  { %v4068_v7 = vpop.eup %3479  ;;  %v826_v9 = vsel %vm759_vm3, %v4066_v6, 0.0 }
 0x385   :  { %827 = vadd.xlane.f32.xlu0 %v826_v9  ;;  %v829_v10 = vsel %vm759_vm3, %v4068_v7, 0.0  ;;  %v3438_v9 = vld [vmem:[#allocation8 + $0x8] sm:$0xff]  }
 0x386   :  { %830 = vadd.xlane.f32.xlu1 %v829_v10 }
 0x3fa   :  { %v810_v12 = vpop.xlane.xlu0 %809 }
 0x3fb   :  { %3481 = vrcp.f32 %v810_v12 }
 0x3fe   :  { %v813_v13 = vpop.xlane.xlu1 %812 }
 0x3ff   :  { %3483 = vrcp.f32 %v813_v13 }
 0x402   :  { %v816_v14 = vpop.xlane.xlu0 %815 }
 0x403   :  { %3485 = vrcp.f32 %v816_v14  ;;  %v819_v15 = vpop.xlane.xlu1 %818 }
 0x404   :  { %3487 = vrcp.f32 %v819_v15 }
 0x405   :  { %v3482_v16 = vpop.eup %3481 }
 0x406   :  { %v840_v17 = vmul.f32 %v3482_v16, %v3466_v41  ;;  %v405_v41 = vmul.bf16 %v3000_v24, %v3933_v36 }
 0x408   :  { %v848_v21 = vpack.c.bf16 %v840_v17, %v840_v17  ;;  %v1045_v44 = vsel %vm859_vm2, %v405_v41, 0 }
 0x409   :  { %v3484_v23 = vpop.eup %3483 }
 0x40a   :  { %v841_v25 = vmul.f32 %v3484_v23, %v3468_v46  ;;  %v822_v26 = vpop.xlane.xlu0 %821  ;;  %3189 = vmatmul.mubr.msk.bf16.vlgmr.msra.gmra.mrb[20].mxu1 %vm759_vm3, %v848_v21 }
 0x40b   :  { %3489 = vrcp.f32 %v822_v26  ;;  %3199 = vmatpush3.bf16.msra.mxu1 %v953_v28  ;;  %v825_v30 = vpop.xlane.xlu1 %824  ;;  %3200 = vmatprep.mubr.msk.bf16.mxu1 %vm3718_vm1, %v3717_v8 }
 0x40c   :  { %3491 = vrcp.f32 %v825_v30  ;;  %v849_v33 = vpack.c.bf16 %v841_v25, %v841_v25  ;;  %3210 = vmatprep.subr.bf16.mxu1 %v3717_v8 }
 0x40d   :  { %v3486_v59 = vpop.eup %3485 }
 0x40e   :  { %v3488_v34 = vpop.eup %3487  ;;  %v842_v35 = vmul.f32 %v3486_v59, %v3470_v38  ;;  %3195 = vmatmul.mubr.msk.bf16.vlgmr.msra.gmra.mrb[24].mxu0 %vm759_vm3, %v849_v33  ;;  %v1091_v38 = vsel %vm859_vm2, %v406_v22, 0 }
 0x40f   :  { %3205 = vmatpush3.bf16.msra.mxu0 %v999_v40  ;;  %3206 = vmatprep.mubr.msk.bf16.mxu0 %vm3718_vm1, %v3717_v8  ;;  %v843_v11 = vmul.f32 %v3488_v34, %v3472_v39  ;;  %v407_v39 = vmul.bf16 %v3000_v24, %v3941_v53 }
 0x410   :  { %v850_v42 = vpack.c.bf16 %v842_v35, %v842_v35  ;;  %3216 = vmatprep.subr.bf16.mxu0 %v3717_v8 }
 0x411   :  { %v851_v46 = vpack.c.bf16 %v843_v11, %v843_v11  ;;  %v1137_v57 = vsel %vm859_vm2, %v407_v39, 0 }
 0x412   :  { %v828_v43 = vpop.xlane.xlu0 %827  ;;  %3201 = vmatmul.mubr.msk.bf16.vlgmr.msra.gmra.mrb[24].mxu1 %vm759_vm3, %v850_v42 }
 0x413   :  { %3493 = vrcp.f32 %v828_v43  ;;  %3211 = vmatpush3.bf16.msra.mxu1 %v1045_v44  ;;  %v831_v45 = vpop.xlane.xlu1 %830  ;;  %3212 = vmatprep.mubr.msk.bf16.mxu1 %vm3718_vm1, %v3717_v8 }
 0x414   :  { %3495 = vrcp.f32 %v831_v45  ;;  %3222 = vmatprep.subr.bf16.mxu1 %v3717_v8 }
 0x415   :  { %v3490_v27 = vpop.eup %3489 }
 0x416   :  { %v3492_v47 = vpop.eup %3491  ;;  %v844_v50 = vmul.f32 %v3490_v27, %v3474_v62  ;;  %3207 = vmatmul.mubr.msk.bf16.vlgmr.msra.gmra.mrb[28].mxu0 %vm759_vm3, %v851_v46  ;;  %v1183_v62 = vsel %vm859_vm2, %v408_v58, 0 }
 0x417   :  { %3217 = vmatpush3.bf16.msra.mxu0 %v1091_v38  ;;  %3218 = vmatprep.mubr.msk.bf16.mxu0 %vm3718_vm1, %v3717_v8  ;;  %v845_v51 = vmul.f32 %v3492_v47, %v4061_v63 }
 0x418   :  { %v852_v56 = vpack.c.bf16 %v844_v50, %v844_v50  ;;  %3228 = vmatprep.subr.bf16.mxu0 %v3717_v8 }
 0x419   :  { %v853_v60 = vpack.c.bf16 %v845_v51, %v845_v51 }
 0x41a   :  { %3213 = vmatmul.mubr.msk.bf16.vlgmr.msra.gmra.mrb[28].mxu1 %vm759_vm3, %v852_v56 }
 0x41b   :  { %3223 = vmatpush3.bf16.msra.mxu1 %v1137_v57  ;;  %3224 = vmatprep.mubr.msk.bf16.mxu1 %vm3718_vm1, %v3717_v8 }
 0x41c   :  { %3234 = vmatprep.subr.bf16.mxu1 %v3717_v8 }
 0x41d   :  { %v3494_v52 = vpop.eup %3493 }
 0x41e   :  { %v3496_v55 = vpop.eup %3495  ;;  %v846_v61 = vmul.f32 %v3494_v52, %v4066_v6  ;;  %3219 = vmatmul.mubr.msk.bf16.vlgmr.msra.gmra.mrb[32].mxu0 %vm759_vm3, %v853_v60  ;;  %v3437_v6 = vld [vmem:[#allocation8] sm:$0xff]  }
 0x41f   :  { %3229 = vmatpush3.bf16.msra.mxu0 %v1183_v62  ;;  %3230 = vmatprep.mubr.msk.bf16.mxu0 %vm3718_vm1, %v3717_v8  ;;  %v847_v63 = vmul.f32 %v3496_v55, %v4068_v7 }
 0x420   :  { %v854_v2 = vpack.c.bf16 %v846_v61, %v846_v61  ;;  %3242 = vmatprep.subr.bf16.mxu0 %v3717_v8 }
 0x421   :  { %v855_v5 = vpack.c.bf16 %v847_v63, %v847_v63 }
 0x422   :  { %3225 = vmatmul.mubr.msk.bf16.vlgmr.msra.gmra.mrb[32].mxu1 %vm759_vm3, %v854_v2 }
 0x423   :  { %3238 = vmatprep.mubr.msk.bf16.mxu1 %vm3718_vm1, %v3717_v8  ;;  %3235 = vmatpush3.bf16.msra.mxu1 %v3437_v6 }
 0x424   :  { %3236 = vmatprep.subr.bf16.mxu1 %v3717_v8 }
 0x426   :  { %3231 = vmatmul.mubr.msk.bf16.vlgmr.msra.gmra.mrb[36].mxu0 %vm759_vm3, %v855_v5 }
 0x427   :  { %3246 = vmatprep.mubr.msk.bf16.mxu0 %vm3718_vm1, %v3717_v8  ;;  %3237 = vmatpush3.bf16.msra.mxu1 %v3438_v9 }
 0x428   :  { %3250 = vmatprep.subr.bf16.mxu1 %v3717_v8 }
 0x4dd   :  { %v897_v7 = vpop.f32.mrb[20].mxu1 }
 0x4de   :  { %v3190_v10 = vpop.f32.mrb[21].mxu1  ;;  %v1225_v15 = vsel %vm146_vm0, %v897_v7, 0.0 }
 0x4df   :  { %v900_v12 = vpop.f32.mrb[22].mxu1 }
 0x4e0   :  { %v3191_v13 = vpop.f32.mrb[23].mxu1 }
 0x4e1   :  { %v943_v14 = vpop.f32.mrb[24].mxu0 }
 0x4e2   :  { %v1226_v16 = vsel %vm146_vm0, %v943_v14, 0.0  ;;  %v3196_v17 = vpop.f32.mrb[25].mxu0 }
 0x4e3   :  { %v1227_v19 = vadd.f32 %v1226_v16, %v1225_v15  ;;  %v946_v21 = vpop.f32.mrb[26].mxu0 }
 0x4e4   :  { %v3197_v23 = vpop.f32.mrb[27].mxu0  ;;  %v3440_v21 = vld [vmem:[#allocation11 + $0x8] sm:$0xff]  }
 0x4e5   :  { %v989_v24 = vpop.f32.mrb[24].mxu1 }
 0x4e6   :  { %v1228_v25 = vsel %vm146_vm0, %v989_v24, 0.0  ;;  %v3202_v26 = vpop.f32.mrb[25].mxu1 }
 0x4e7   :  { %v1229_v28 = vadd.f32 %v1228_v25, %v1227_v19  ;;  %v992_v29 = vpop.f32.mrb[26].mxu1  ;;  %v3439_v19 = vld [vmem:[#allocation11] sm:$0xff]  }
 0x4e8   :  { %v3203_v30 = vpop.f32.mrb[27].mxu1  ;;  %3243 = vmatpush3.bf16.msra.mxu0 %v3439_v19 }
 0x4e9   :  { %v1035_v33 = vpop.f32.mrb[28].mxu0  ;;  %3244 = vmatprep.subr.bf16.mxu0 %v3717_v8 }
 0x4ea   :  { %v1230_v59 = vsel %vm146_vm0, %v1035_v33, 0.0  ;;  %v3208_v34 = vpop.f32.mrb[29].mxu0 }
 0x4eb   :  { %v1231_v35 = vadd.f32 %v1230_v59, %v1229_v28  ;;  %v1038_v40 = vpop.f32.mrb[30].mxu0  ;;  %v2925_v34 = vld [vmem:[#allocation10] ss:$0 sm:$0xff] }
 0x4ec   :  { %v3209_v41 = vpop.f32.mrb[31].mxu0  ;;  %3245 = vmatpush3.bf16.msra.mxu0 %v3440_v21 }
 0x4ed   :  { %v1081_v11 = vpop.f32.mrb[28].mxu1  ;;  %3262 = vmatprep.subr.bf16.mxu0 %v3717_v8 }
 0x4ee   :  { %v3214_v42 = vpop.f32.mrb[29].mxu1  ;;  %v1232_v45 = vsel %vm146_vm0, %v1081_v11, 0.0 }
 0x4ef   :  { %v1084_v43 = vpop.f32.mrb[30].mxu1  ;;  %v3443_v42 = vld [vmem:[%s4422_s10 + $0x10] sm:$0xff]  }
 0x4f0   :  { %v3215_v44 = vpop.f32.mrb[31].mxu1  ;;  %v3444_v43 = vld [vmem:[%s4422_s10 + $0x18] sm:$0xff]  }
 0x4f1   :  { %v1127_v22 = vpop.f32.mrb[32].mxu0 }
 0x4f2   :  { %v1233_v46 = vsel %vm146_vm0, %v1127_v22, 0.0  ;;  %v3220_v27 = vpop.f32.mrb[33].mxu0 }
 0x4f3   :  { %v1234_v47 = vadd.f32 %v1233_v46, %v1232_v45  ;;  %v1130_v50 = vpop.f32.mrb[34].mxu0 }
 0x4f4   :  { %v3221_v38 = vpop.f32.mrb[35].mxu0 }
 0x4f5   :  { %v1173_v39 = vpop.f32.mrb[32].mxu1 }
 0x4f6   :  { %v1235_v51 = vsel %vm146_vm0, %v1173_v39, 0.0  ;;  %v3226_v56 = vpop.f32.mrb[33].mxu1 }
 0x4f7   :  { %v1236_v57 = vadd.f32 %v1235_v51, %v1234_v47  ;;  %v1176_v58 = vpop.f32.mrb[34].mxu1 }
 0x4f8   :  { %v3227_v60 = vpop.f32.mrb[35].mxu1 }
 0x4f9   :  { %v1219_v52 = vpop.f32.mrb[36].mxu0 }
 0x4fa   :  { %v1237_v55 = vsel %vm146_vm0, %v1219_v52, 0.0  ;;  %v3232_v61 = vpop.f32.mrb[37].mxu0 }
 0x4fb   :  { %v1238_v62 = vadd.f32 %v1237_v55, %v1236_v57  ;;  %v1222_v63 = vpop.f32.mrb[38].mxu0 }
 0x4fc   :  { %v3233_v2 = vpop.f32.mrb[39].mxu0  ;;  %v3446_v63 = vld [vmem:[#allocation7 + $0x10] sm:$0xff]  }
 0x4fd   :  { %v1239_v5 = vpack.c.bf16 %v1238_v62, %v1231_v35  ;;  %v3445_v62 = vld [vmem:[%s4416_s4 + $0x10] sm:$0xff]   ;;  %v3447_v2 = vld [vmem:[%s4416_s4 + $0x18] sm:$0xff]  }
 0x4ff   :  { %3239 = vmatmul.mubr.msk.bf16.vlgmr.msra.gmra.mrb[36].mxu1 %vm146_vm0, %v1239_v5  ;;  %v3448_v5 = vld [vmem:[#allocation7 + $0x18] sm:$0xff]  }
 0x500   :  { %3258 = vmatprep.mubr.msk.bf16.mxu1 %vm3718_vm1, %v3717_v8 }
 0x5d2   :  { %v1293_v6 = vpop.f32.mrb[36].mxu1 }
 0x5d3   :  { %v1300_v9 = vadd.f32 %v1293_v6, %v3879_v0  ;;  %v3240_v7 = vpop.f32.mrb[37].mxu1  ;;  %v3441_v0 = vld [vmem:[%s4422_s10] sm:$0xff]  }
 0x5d4   :  { %v1296_v10 = vpop.f32.mrb[38].mxu1  ;;  %3251 = vmatpush3.bf16.msra.mxu1 %v3441_v0 }
 0x5d5   :  { %v1301_v12 = vadd.f32 %v1296_v10, %v3881_v1  ;;  %v3241_v13 = vpop.f32.mrb[39].mxu1  ;;  %v1303_v14 = vmul.f32 %v1300_v9, %v1300_v9  ;;  %v3442_v1 = vld [vmem:[%s4422_s10 + $0x8] sm:$0xff]   ;;  %3252 = vmatprep.subr.bf16.mxu1 %v3717_v8 }
 0x5d7   :  { %v1305_v15 = vsel %vm146_vm0, %v1303_v14, 0.0  ;;  %v1304_v16 = vmul.f32 %v1301_v12, %v1301_v12 }
 0x5d8   :  { %1306 = vadd.xlane.f32.xlu0 %v1305_v15  ;;  %3253 = vmatpush3.bf16.msra.mxu1 %v3442_v1  ;;  %v3449_v1 = vld [vmem:[#allocation5 + $0x10] sm:$0xff]  }
 0x5d9   :  { %v1308_v17 = vsel %vm146_vm0, %v1304_v16, 0.0  ;;  %3254 = vmatprep.subr.bf16.mxu1 %v3717_v8 }
 0x5da   :  { %1309 = vadd.xlane.f32.xlu1 %v1308_v17  ;;  %v2934_v17 = vld [vmem:[%s4415_s3 + $0x1] ss:$0 sm:$0xff] }
 0x5dc   :  { %3255 = vmatpush3.bf16.msra.mxu1 %v3443_v42 }
 0x5dd   :  { %3256 = vmatprep.subr.bf16.mxu1 %v3717_v8 }
 0x5e0   :  { %3257 = vmatpush3.bf16.msra.mxu1 %v3444_v43 }
 0x5e1   :  { %3278 = vmatprep.subr.bf16.mxu1 %v3717_v8 }
 0x665   :  { %v1307_v23 = vpop.xlane.xlu0 %1306 }
 0x666   :  { %v1311_v24 = vmul.f32 0.03125, %v1307_v23 }
 0x667   :  { %v1310_v25 = vpop.xlane.xlu1 %1309 }
 0x668   :  { %v1313_v26 = vadd.f32 1e-06, %v1311_v24  ;;  %v1312_v28 = vmul.f32 0.03125, %v1310_v25  ;;  %v3450_v24 = vld [vmem:[#allocation5 + $0x18] sm:$0xff]  }
 0x66a   :  { %3497 = vrsqrt.f32 %v1313_v26  ;;  %v1314_v29 = vadd.f32 1e-06, %v1312_v28 }
 0x66c   :  { %3499 = vrsqrt.f32 %v1314_v29 }
 0x674   :  { %v3498_v30 = vpop.eup %3497 }
 0x675   :  { %v1317_v33 = vmul.f32 %v3498_v30, %v1300_v9 }
 0x676   :  { %v3500_v59 = vpop.eup %3499 }
 0x677   :  { %v1318_v35 = vmul.f32 %v3500_v59, %v1301_v12  ;;  %v1323_v40 = vmul.f32 %v2925_v34, %v1317_v33 }
 0x679   :  { %v1324_v41 = vmul.f32 %v2925_v34, %v1318_v35 }
 0x67b   :  { %v1325_v11 = vpack.c.bf16 %v1324_v41, %v1323_v40 }
 0x67d   :  { %3247 = vmatmul.mubr.msk.bf16.vlgmr.msra.gmra.mrb[40].mxu0 %vm146_vm0, %v1325_v11 }
 0x67e   :  { %3266 = vmatprep.mubr.msk.bf16.mxu0 %vm3718_vm1, %v3717_v8  ;;  %3263 = vmatpush3.bf16.msra.mxu0 %v3445_v62 }
 0x67f   :  { %3264 = vmatprep.subr.bf16.mxu0 %v3717_v8 }
 0x682   :  { %3265 = vmatpush3.bf16.msra.mxu0 %v3447_v2 }
 0x683   :  { %3270 = vmatprep.subr.bf16.mxu0 %v3717_v8 }
 0x750   :  { %v1379_v44 = vpop.f32.mrb[40].mxu0 }
 0x751   :  { %v3248_v22 = vpop.f32.mrb[41].mxu0  ;;  %v1386_v46 = vmax.f32 %v1379_v44, 0.0 }
 0x752   :  { %v1382_v45 = vpop.f32.mrb[42].mxu0 }
 0x753   :  { %v1387_v27 = vmax.f32 %v1382_v45, 0.0  ;;  %v3249_v47 = vpop.f32.mrb[43].mxu0 }
 0x755   :  { %v1388_v50 = vpack.c.bf16 %v1387_v27, %v1386_v46 }
 0x757   :  { %3259 = vmatmul.mubr.msk.bf16.vlgmr.msra.gmra.mrb[40].mxu1 %vm1421_vm4, %v1388_v50 }
 0x758   :  { %3282 = vmatprep.mubr.msk.bf16.mxu1 %vm3718_vm1, %v3717_v8  ;;  %3279 = vmatpush3.bf16.msra.mxu1 %v3446_v63 }
 0x759   :  { %3280 = vmatprep.subr.bf16.mxu1 %v3717_v8 }
 0x75c   :  { %3281 = vmatpush3.bf16.msra.mxu1 %v3448_v5 }
 0x75d   :  { %3292 = vmatprep.subr.bf16.mxu1 %v3717_v8 }
 0x82a   :  { %v1459_v38 = vpop.f32.mrb[40].mxu1 }
 0x82b   :  { %v4164_v39 = vadd.f32 %v1459_v38, %v1300_v9  ;;  %v3260_v51 = vpop.f32.mrb[41].mxu1 }
 0x82c   :  { %v1462_v56 = vpop.f32.mrb[42].mxu1 }
 0x82d   :  { %v4166_v57 = vadd.f32 %v1462_v56, %v1301_v12  ;;  %v3261_v58 = vpop.f32.mrb[43].mxu1  ;;  %v1469_v60 = vmul.f32 %v4164_v39, %v4164_v39 }
 0x82f   :  { %v1471_v52 = vsel %vm146_vm0, %v1469_v60, 0.0  ;;  %v1470_v55 = vmul.f32 %v4166_v57, %v4166_v57 }
 0x830   :  { %1472 = vadd.xlane.f32.xlu0 %v1471_v52 }
 0x831   :  { %v1474_v61 = vsel %vm146_vm0, %v1470_v55, 0.0 }
 0x832   :  { %1475 = vadd.xlane.f32.xlu1 %v1474_v61 }
 0x8bd   :  { %v1473_v6 = vpop.xlane.xlu0 %1472 }
 0x8be   :  { %v1477_v9 = vmul.f32 0.03125, %v1473_v6 }
 0x8bf   :  { %v1476_v7 = vpop.xlane.xlu1 %1475 }
 0x8c0   :  { %v1479_v10 = vadd.f32 1e-06, %v1477_v9  ;;  %v1478_v12 = vmul.f32 0.03125, %v1476_v7 }
 0x8c2   :  { %3501 = vrsqrt.f32 %v1479_v10  ;;  %v1480_v13 = vadd.f32 1e-06, %v1478_v12 }
 0x8c4   :  { %3503 = vrsqrt.f32 %v1480_v13 }
 0x8cc   :  { %v3502_v14 = vpop.eup %3501 }
 0x8cd   :  { %v1483_v15 = vmul.f32 %v3502_v14, %v4164_v39 }
 0x8ce   :  { %v3504_v16 = vpop.eup %3503 }
 0x8cf   :  { %v1484_v19 = vmul.f32 %v3504_v16, %v4166_v57  ;;  %v1489_v21 = vmul.f32 %v2934_v17, %v1483_v15 }
 0x8d1   :  { %v1490_v0 = vmul.f32 %v2934_v17, %v1484_v19 }
 0x8d3   :  { %v1491_v23 = vpack.c.bf16 %v1490_v0, %v1489_v21 }
 0x8d5   :  { %3267 = vmatmul.mubr.msk.bf16.vlgmr.msra.gmra.mrb[44].mxu0 %vm146_vm0, %v1491_v23  ;;  %3283 = vmatmul.mubr.msk.bf16.vlgmr.msra.gmra.mrb[44].mxu1 %vm146_vm0, %v1491_v23 }
 0x8d6   :  { %3271 = vmatpush3.bf16.msra.mxu0 %v3449_v1  ;;  %3274 = vmatprep.mubr.msk.bf16.mxu0 %vm3718_vm1, %v3717_v8 }
 0x8d7   :  { %3272 = vmatprep.subr.bf16.mxu0 %v3717_v8  ;;  %3294 = vmatprep.mubr.msk.bf16.mxu1 %vm3718_vm1, %v3717_v8 }
 0x8da   :  { %3273 = vmatpush3.bf16.msra.mxu0 %v3450_v24 }
 0x8db   :  { %3286 = vmatprep.subr.bf16.mxu0 %v3717_v8 }
 0x8dd   :  { %3275 = vmatmul.mubr.msk.bf16.vlgmr.msra.gmra.mrb[48].mxu0 %vm146_vm0, %v1491_v23 }
 0x8de   :  { %3288 = vmatprep.mubr.msk.bf16.mxu0 %vm3718_vm1, %v3717_v8 }
 0x9a8   :  { %v1546_v25 = vpop.f32.mrb[44].mxu0  ;;  %v1662_v26 = vpop.f32.mrb[44].mxu1 }
 0x9a9   :  { %v3268_v28 = vpop.f32.mrb[45].mxu0  ;;  %v3284_v29 = vpop.f32.mrb[45].mxu1  ;;  %v3001_v47 = vpack.c.bf16 %v1546_v25, %v1546_v25  ;;  %v4234_v63 = vpack.c.bf16 %v1662_v26, %v1662_v26 }
 0x9aa   :  { %v1549_v30 = vpop.f32.mrb[46].mxu0  ;;  %v4200_v33 = vpop.f32.mrb[46].mxu1 }
 0x9ab   :  { %v3269_v59 = vpop.f32.mrb[47].mxu0  ;;  %v3285_v34 = vpop.f32.mrb[47].mxu1  ;;  %v3002_v62 = vpack.c.bf16 %v1549_v30, %v1549_v30  ;;  %v1699_v6 = vmul.bf16 %v4234_v63, %v3933_v36  ;;  %v1700_v9 = vmul.bf16 %v4234_v63, %v3935_v37 }
 0x9ad   :  { %v2157_v7 = vsel %vm859_vm2, %v1699_v6, 0  ;;  %v2203_v10 = vsel %vm859_vm2, %v1700_v9, 0 }
 0x9b0   :  { %v1604_v35 = vpop.f32.mrb[48].mxu0 }
 0x9b1   :  { %v3003_v40 = vpack.c.bf16 %v1604_v35, %v1604_v35  ;;  %v3276_v41 = vpop.f32.mrb[49].mxu0 }
 0x9b2   :  { %v1607_v11 = vpop.f32.mrb[50].mxu0 }
 0x9b3   :  { %v3277_v42 = vpop.f32.mrb[51].mxu0  ;;  %v1683_v43 = vmul.bf16 %v3003_v40, %v3933_v36  ;;  %v1684_v44 = vmul.bf16 %v3003_v40, %v3935_v37  ;;  %v1685_v46 = vmul.bf16 %v3003_v40, %v3941_v53  ;;  %v1686_v27 = vmul.bf16 %v3003_v40, %v3943_v54 }
 0x9b4   :  { %v3004_v50 = vpack.c.bf16 %v1607_v11, %v1607_v11 }
 0x9b5   :  { %v1711_v22 = vsel %vm146_vm0, %v1683_v43, 0  ;;  %v1754_v45 = vsel %vm146_vm0, %v1684_v44, 0  ;;  %v1797_v38 = vsel %vm146_vm0, %v1685_v46, 0  ;;  %v1840_v51 = vsel %vm146_vm0, %v1686_v27, 0 }
 0x9b6   :  { %3287 = vmatpush3.bf16.xpose.msra.mxu0 %v1711_v22  ;;  %3293 = vmatpush3.bf16.xpose.msra.mxu1 %v1754_v45  ;;  %v1687_v56 = vmul.bf16 %v3004_v50, %v3933_v36  ;;  %v1688_v58 = vmul.bf16 %v3004_v50, %v3935_v37  ;;  %v1689_v55 = vmul.bf16 %v3004_v50, %v3941_v53 }
 0x9b7   :  { %3298 = vmatprep.subr.bf16.mxu0 %v3717_v8  ;;  %3304 = vmatprep.subr.bf16.mxu1 %v3717_v8  ;;  %v1690_v61 = vmul.bf16 %v3004_v50, %v3943_v54 }
 0x9b8   :  { %v1886_v60 = vsel %vm146_vm0, %v1687_v56, 0  ;;  %v1929_v52 = vsel %vm146_vm0, %v1688_v58, 0  ;;  %v1972_v2 = vsel %vm146_vm0, %v1689_v55, 0 }
 0x9b9   :  { %v2015_v5 = vsel %vm146_vm0, %v1690_v61, 0 }
 0x9bd   :  { %3289 = vmatmul.mubr.msk.bf16.vlgmr.msra.gmra.mrb[52].mxu0 %vm146_vm0, %v3001_v47  ;;  %3295 = vmatmul.mubr.msk.bf16.vlgmr.msra.gmra.mrb[48].mxu1 %vm146_vm0, %v3001_v47 }
 0x9be   :  { %3299 = vmatpush3.bf16.xpose.msra.mxu0 %v1797_v38  ;;  %3305 = vmatpush3.bf16.xpose.msra.mxu1 %v1840_v51 }
 0x9bf   :  { %3300 = vmatprep.mubr.msk.bf16.mxu0 %vm3718_vm1, %v3717_v8  ;;  %3306 = vmatprep.mubr.msk.bf16.mxu1 %vm3718_vm1, %v3717_v8 }
 0x9c0   :  { %3310 = vmatprep.subr.bf16.mxu0 %v3717_v8  ;;  %3316 = vmatprep.subr.bf16.mxu1 %v3717_v8 }
 0x9c5   :  { %3301 = vmatmul.mubr.msk.bf16.vlgmr.msra.gmra.mrb[56].mxu0 %vm146_vm0, %v3001_v47  ;;  %3307 = vmatmul.mubr.msk.bf16.vlgmr.msra.gmra.mrb[52].mxu1 %vm146_vm0, %v3001_v47 }
 0x9c6   :  { %3311 = vmatpush3.bf16.xpose.msra.mxu0 %v1886_v60  ;;  %3317 = vmatpush3.bf16.xpose.msra.mxu1 %v1929_v52 }
 0x9c7   :  { %3312 = vmatprep.mubr.msk.bf16.mxu0 %vm3718_vm1, %v3717_v8  ;;  %3318 = vmatprep.mubr.msk.bf16.mxu1 %vm3718_vm1, %v3717_v8 }
 0x9c8   :  { %3322 = vmatprep.subr.bf16.mxu0 %v3717_v8  ;;  %3328 = vmatprep.subr.bf16.mxu1 %v3717_v8 }
 0x9cd   :  { %3313 = vmatmul.mubr.msk.bf16.vlgmr.msra.gmra.mrb[60].mxu0 %vm146_vm0, %v3002_v62  ;;  %3319 = vmatmul.mubr.msk.bf16.vlgmr.msra.gmra.mrb[56].mxu1 %vm146_vm0, %v3002_v62 }
 0x9ce   :  { %3323 = vmatpush3.bf16.xpose.msra.mxu0 %v1972_v2  ;;  %3329 = vmatpush3.bf16.xpose.msra.mxu1 %v2015_v5 }
 0x9cf   :  { %3324 = vmatprep.mubr.msk.bf16.mxu0 %vm3718_vm1, %v3717_v8  ;;  %3330 = vmatprep.mubr.msk.bf16.mxu1 %vm3718_vm1, %v3717_v8 }
 0x9d0   :  { %3334 = vmatprep.subr.bf16.mxu0 %v3717_v8  ;;  %3340 = vmatprep.subr.bf16.mxu1 %v3717_v8 }
 0x9d5   :  { %3325 = vmatmul.mubr.msk.bf16.vlgmr.msra.gmra.mrb[64].mxu0 %vm146_vm0, %v3002_v62  ;;  %3331 = vmatmul.mubr.msk.bf16.vlgmr.msra.gmra.mrb[60].mxu1 %vm146_vm0, %v3002_v62 }
 0x9d6   :  { %3335 = vmatpush3.bf16.msra.mxu0 %v2157_v7  ;;  %3341 = vmatpush3.bf16.msra.mxu1 %v2203_v10 }
 0x9d7   :  { %3336 = vmatprep.mubr.msk.bf16.mxu0 %vm3718_vm1, %v3717_v8  ;;  %3342 = vmatprep.mubr.msk.bf16.mxu1 %vm3718_vm1, %v3717_v8 }
 0x9d8   :  { %3346 = vmatprep.subr.bf16.mxu0 %v3717_v8  ;;  %3352 = vmatprep.subr.bf16.mxu1 %v3717_v8 }
 0xa90   :  { %v1747_v12 = vpop.f32.mrb[52].mxu0  ;;  %v1790_v13 = vpop.f32.mrb[48].mxu1 }
 0xa91   :  { %v1748_v14 = vadd.f32 %v1747_v12, %v4004_v18  ;;  %v1791_v15 = vadd.f32 %v1790_v13, %v4009_v20  ;;  %v3290_v16 = vpop.f32.mrb[53].mxu0  ;;  %v3296_v17 = vpop.f32.mrb[49].mxu1 }
 0xa92   :  { %v1750_v19 = vpop.f32.mrb[54].mxu0  ;;  %v1793_v21 = vpop.f32.mrb[50].mxu1 }
 0xa93   :  { %v3291_v0 = vpop.f32.mrb[55].mxu0  ;;  %v3297_v1 = vpop.f32.mrb[51].mxu1  ;;  %v2060_v23 = vsel %vm759_vm3, %v1791_v15, -inf  ;;  %v2057_v24 = vsel %vm759_vm3, %v1748_v14, -inf }
 0xa94   :  { %2061 = vmax.xlane.f32.xlu1 %v2060_v23  ;;  %2058 = vmax.xlane.f32.xlu0 %v2057_v24 }
 0xa98   :  { %v1833_v25 = vpop.f32.mrb[56].mxu0  ;;  %v1876_v26 = vpop.f32.mrb[52].mxu1 }
 0xa99   :  { %v1834_v28 = vadd.f32 %v1833_v25, %v4017_v31  ;;  %v1877_v18 = vadd.f32 %v1876_v26, %v4022_v32  ;;  %v3302_v29 = vpop.f32.mrb[57].mxu0  ;;  %v3308_v20 = vpop.f32.mrb[53].mxu1 }
 0xa9a   :  { %v1836_v30 = vpop.f32.mrb[58].mxu0  ;;  %v1879_v59 = vpop.f32.mrb[54].mxu1 }
 0xa9b   :  { %v3303_v34 = vpop.f32.mrb[59].mxu0  ;;  %v3309_v35 = vpop.f32.mrb[55].mxu1  ;;  %v2066_v40 = vsel %vm759_vm3, %v1877_v18, -inf  ;;  %v2063_v41 = vsel %vm759_vm3, %v1834_v28, -inf }
 0xa9c   :  { %2067 = vmax.xlane.f32.xlu1 %v2066_v40  ;;  %2064 = vmax.xlane.f32.xlu0 %v2063_v41 }
 0xaa0   :  { %v1922_v11 = vpop.f32.mrb[60].mxu0  ;;  %v1965_v42 = vpop.f32.mrb[56].mxu1 }
 0xaa1   :  { %v1923_v43 = vadd.f32 %v1922_v11, %v4032_v48  ;;  %v1966_v31 = vadd.f32 %v1965_v42, %v4037_v49  ;;  %v3314_v44 = vpop.f32.mrb[61].mxu0  ;;  %v3320_v32 = vpop.f32.mrb[57].mxu1 }
 0xaa2   :  { %v1925_v22 = vpop.f32.mrb[62].mxu0  ;;  %v1968_v45 = vpop.f32.mrb[58].mxu1 }
 0xaa3   :  { %v3315_v46 = vpop.f32.mrb[63].mxu0  ;;  %v3321_v27 = vpop.f32.mrb[59].mxu1  ;;  %v2072_v47 = vsel %vm759_vm3, %v1966_v31, -inf  ;;  %v2069_v50 = vsel %vm759_vm3, %v1923_v43, -inf }
 0xaa4   :  { %2073 = vmax.xlane.f32.xlu1 %v2072_v47  ;;  %2070 = vmax.xlane.f32.xlu0 %v2069_v50 }
 0xaa8   :  { %v2008_v38 = vpop.f32.mrb[64].mxu0  ;;  %v2051_v51 = vpop.f32.mrb[60].mxu1 }
 0xaa9   :  { %v2009_v56 = vadd.f32 %v2008_v38, %v4046_v3  ;;  %v2052_v48 = vadd.f32 %v2051_v51, %v4051_v4  ;;  %v3326_v58 = vpop.f32.mrb[65].mxu0  ;;  %v3332_v49 = vpop.f32.mrb[61].mxu1 }
 0xaaa   :  { %v2011_v60 = vpop.f32.mrb[66].mxu0  ;;  %v2054_v52 = vpop.f32.mrb[62].mxu1  ;;  %v1702_v58 = vmul.bf16 %v4234_v63, %v3943_v54 }
 0xaab   :  { %v3327_v55 = vpop.f32.mrb[67].mxu0  ;;  %v3333_v61 = vpop.f32.mrb[63].mxu1  ;;  %v2078_v62 = vsel %vm759_vm3, %v2052_v48, -inf  ;;  %v2075_v2 = vsel %vm759_vm3, %v2009_v56, -inf  ;;  %v1701_v60 = vmul.bf16 %v4234_v63, %v3941_v53 }
 0xaac   :  { %2079 = vmax.xlane.f32.xlu1 %v2078_v62  ;;  %2076 = vmax.xlane.f32.xlu0 %v2075_v2  ;;  %v3006_v61 = vpack.c.bf16 %v4200_v33, %v4200_v33  ;;  %v2295_v62 = vsel %vm859_vm2, %v1702_v58, 0 }
 0xb21   :  { %v2062_v5 = vpop.xlane.xlu1 %2061  ;;  %v2059_v6 = vpop.xlane.xlu0 %2058 }
 0xb22   :  { %v2082_v9 = vsub.f32 %v1791_v15, %v2062_v5  ;;  %v2081_v7 = vsub.f32 %v1748_v14, %v2059_v6  ;;  %v2249_v5 = vsel %vm859_vm2, %v1701_v60, 0 }
 0xb24   :  { %v2091_v10 = vmul.f32 1.442695, %v2082_v9  ;;  %v2089_v3 = vmul.f32 1.442695, %v2081_v7  ;;  %v1704_v7 = vmul.bf16 %v3006_v61, %v3935_v37 }
 0xb26   :  { %3505 = vpow2.f32 %v2091_v10 }
 0xb27   :  { %3507 = vpow2.f32 %v2089_v3  ;;  %v1703_v3 = vmul.bf16 %v3006_v61, %v3933_v36 }
 0xb29   :  { %v2068_v4 = vpop.xlane.xlu1 %2067  ;;  %v2065_v12 = vpop.xlane.xlu0 %2064 }
 0xb2a   :  { %v2084_v13 = vsub.f32 %v1877_v18, %v2068_v4  ;;  %v2083_v16 = vsub.f32 %v1834_v28, %v2065_v12 }
 0xb2c   :  { %v2095_v17 = vmul.f32 1.442695, %v2084_v13  ;;  %v2093_v19 = vmul.f32 1.442695, %v2083_v16  ;;  %v2387_v13 = vsel %vm859_vm2, %v1704_v7, 0 }
 0xb2e   :  { %3509 = vpow2.f32 %v2095_v17  ;;  %v2341_v17 = vsel %vm859_vm2, %v1703_v3, 0 }
 0xb2f   :  { %3511 = vpow2.f32 %v2093_v19 }
 0xb30   :  { %v3506_v21 = vpop.eup %3505 }
 0xb31   :  { %v3508_v0 = vpop.eup %3507  ;;  %v2074_v1 = vpop.xlane.xlu1 %2073  ;;  %v2108_v24 = vsel %vm759_vm3, %v3506_v21, 0.0 }
 0xb32   :  { %v2071_v23 = vpop.xlane.xlu0 %2070  ;;  %v2086_v15 = vsub.f32 %v1966_v31, %v2074_v1  ;;  %2109 = vadd.xlane.f32.xlu1 %v2108_v24  ;;  %v2105_v25 = vsel %vm759_vm3, %v3508_v0, 0.0 }
 0xb33   :  { %v2085_v14 = vsub.f32 %v1923_v43, %v2071_v23  ;;  %2106 = vadd.xlane.f32.xlu0 %v2105_v25  ;;  %v1705_v23 = vmul.bf16 %v3006_v61, %v3941_v53 }
 0xb34   :  { %v2099_v26 = vmul.f32 1.442695, %v2086_v15 }
 0xb35   :  { %v2097_v29 = vmul.f32 1.442695, %v2085_v14  ;;  %v2433_v25 = vsel %vm859_vm2, %v1705_v23, 0 }
 0xb36   :  { %3513 = vpow2.f32 %v2099_v26 }
 0xb37   :  { %3515 = vpow2.f32 %v2097_v29 }
 0xb38   :  { %v3510_v28 = vpop.eup %3509 }
 0xb39   :  { %v3512_v18 = vpop.eup %3511  ;;  %v2080_v20 = vpop.xlane.xlu1 %2079  ;;  %v2114_v59 = vsel %vm759_vm3, %v3510_v28, 0.0 }
 0xb3a   :  { %v2077_v30 = vpop.xlane.xlu0 %2076  ;;  %v2088_v34 = vsub.f32 %v2052_v48, %v2080_v20  ;;  %2115 = vadd.xlane.f32.xlu1 %v2114_v59  ;;  %v2111_v40 = vsel %vm759_vm3, %v3512_v18, 0.0  ;;  %v3451_v20 = vld [vmem:[#allocation8 + $0x10] sm:$0xff]  }
 0xb3b   :  { %v2087_v35 = vsub.f32 %v2009_v56, %v2077_v30  ;;  %2112 = vadd.xlane.f32.xlu0 %v2111_v40  ;;  %v3452_v30 = vld [vmem:[#allocation8 + $0x18] sm:$0xff]  }
 0xb3c   :  { %v2103_v41 = vmul.f32 1.442695, %v2088_v34 }
 0xb3d   :  { %v2101_v11 = vmul.f32 1.442695, %v2087_v35 }
 0xb3e   :  { %3517 = vpow2.f32 %v2103_v41 }
 0xb3f   :  { %3519 = vpow2.f32 %v2101_v11 }
 0xb40   :  { %v4280_v42 = vpop.eup %3513 }
 0xb41   :  { %v4282_v43 = vpop.eup %3515  ;;  %v2120_v31 = vsel %vm759_vm3, %v4280_v42, 0.0 }
 0xb42   :  { %2121 = vadd.xlane.f32.xlu1 %v2120_v31  ;;  %v2117_v44 = vsel %vm759_vm3, %v4282_v43, 0.0 }
 0xb43   :  { %2118 = vadd.xlane.f32.xlu0 %v2117_v44 }
 0xb48   :  { %v4288_v32 = vpop.eup %3517 }
 0xb49   :  { %v4290_v22 = vpop.eup %3519  ;;  %v2126_v45 = vsel %vm759_vm3, %v4288_v32, 0.0 }
 0xb4a   :  { %2127 = vadd.xlane.f32.xlu1 %v2126_v45  ;;  %v2123_v46 = vsel %vm759_vm3, %v4290_v22, 0.0 }
 0xb4b   :  { %2124 = vadd.xlane.f32.xlu0 %v2123_v46 }
 0xbbf   :  { %v2110_v27 = vpop.xlane.xlu1 %2109 }
 0xbc0   :  { %3521 = vrcp.f32 %v2110_v27  ;;  %v2107_v47 = vpop.xlane.xlu0 %2106 }
 0xbc1   :  { %3523 = vrcp.f32 %v2107_v47 }
 0xbc7   :  { %v2116_v50 = vpop.xlane.xlu1 %2115 }
 0xbc8   :  { %3525 = vrcp.f32 %v2116_v50  ;;  %v2113_v38 = vpop.xlane.xlu0 %2112 }
 0xbc9   :  { %3527 = vrcp.f32 %v2113_v38 }
 0xbca   :  { %v3522_v51 = vpop.eup %3521 }
 0xbcb   :  { %v3524_v56 = vpop.eup %3523  ;;  %v2138_v48 = vmul.f32 %v3522_v51, %v3506_v21 }
 0xbcc   :  { %v2137_v49 = vmul.f32 %v3524_v56, %v3508_v0  ;;  %v1706_v0 = vmul.bf16 %v3006_v61, %v3943_v54 }
 0xbcd   :  { %v2146_v52 = vpack.c.bf16 %v2138_v48, %v2138_v48 }
 0xbce   :  { %v2145_v55 = vpack.c.bf16 %v2137_v49, %v2137_v49  ;;  %v2479_v14 = vsel %vm859_vm2, %v1706_v0, 0 }
 0xbcf   :  { %3343 = vmatmul.mubr.msk.bf16.vlgmr.msra.gmra.mrb[64].mxu1 %vm759_vm3, %v2146_v52  ;;  %v2122_v2 = vpop.xlane.xlu1 %2121 }
 0xbd0   :  { %3353 = vmatpush3.bf16.msra.mxu1 %v2295_v62  ;;  %3529 = vrcp.f32 %v2122_v2  ;;  %3337 = vmatmul.mubr.msk.bf16.vlgmr.msra.gmra.mrb[68].mxu0 %vm759_vm3, %v2145_v55  ;;  %v2119_v6 = vpop.xlane.xlu0 %2118 }
 0xbd1   :  { %3347 = vmatpush3.bf16.msra.mxu0 %v2249_v5  ;;  %3531 = vrcp.f32 %v2119_v6  ;;  %3348 = vmatprep.mubr.msk.bf16.mxu0 %vm3718_vm1, %v3717_v8 }
 0xbd2   :  { %v3526_v63 = vpop.eup %3525  ;;  %3354 = vmatprep.mubr.msk.bf16.mxu1 %vm3718_vm1, %v3717_v8  ;;  %3358 = vmatprep.subr.bf16.mxu0 %v3717_v8 }
 0xbd3   :  { %v3528_v33 = vpop.eup %3527  ;;  %v2140_v9 = vmul.f32 %v3526_v63, %v3510_v28  ;;  %3364 = vmatprep.subr.bf16.mxu1 %v3717_v8 }
 0xbd4   :  { %v2139_v10 = vmul.f32 %v3528_v33, %v3512_v18 }
 0xbd5   :  { %v2148_v4 = vpack.c.bf16 %v2140_v9, %v2140_v9 }
 0xbd6   :  { %v2147_v12 = vpack.c.bf16 %v2139_v10, %v2139_v10 }
 0xbd7   :  { %3355 = vmatmul.mubr.msk.bf16.vlgmr.msra.gmra.mrb[68].mxu1 %vm759_vm3, %v2148_v4  ;;  %v2128_v16 = vpop.xlane.xlu1 %2127 }
 0xbd8   :  { %3365 = vmatpush3.bf16.msra.mxu1 %v2387_v13  ;;  %3533 = vrcp.f32 %v2128_v16  ;;  %3349 = vmatmul.mubr.msk.bf16.vlgmr.msra.gmra.mrb[72].mxu0 %vm759_vm3, %v2147_v12  ;;  %v2125_v19 = vpop.xlane.xlu0 %2124 }
 0xbd9   :  { %3359 = vmatpush3.bf16.msra.mxu0 %v2341_v17  ;;  %3535 = vrcp.f32 %v2125_v19  ;;  %3360 = vmatprep.mubr.msk.bf16.mxu0 %vm3718_vm1, %v3717_v8 }
 0xbda   :  { %v3530_v36 = vpop.eup %3529  ;;  %3366 = vmatprep.mubr.msk.bf16.mxu1 %vm3718_vm1, %v3717_v8  ;;  %3370 = vmatprep.subr.bf16.mxu0 %v3717_v8 }
 0xbdb   :  { %v3532_v37 = vpop.eup %3531  ;;  %v2142_v21 = vmul.f32 %v3530_v36, %v4280_v42  ;;  %3376 = vmatprep.subr.bf16.mxu1 %v3717_v8 }
 0xbdc   :  { %v2141_v1 = vmul.f32 %v3532_v37, %v4282_v43 }
 0xbdd   :  { %v2150_v24 = vpack.c.bf16 %v2142_v21, %v2142_v21 }
 0xbde   :  { %v2149_v15 = vpack.c.bf16 %v2141_v1, %v2141_v1 }
 0xbdf   :  { %3367 = vmatmul.mubr.msk.bf16.vlgmr.msra.gmra.mrb[72].mxu1 %vm759_vm3, %v2150_v24 }
 0xbe0   :  { %3361 = vmatmul.mubr.msk.bf16.vlgmr.msra.gmra.mrb[76].mxu0 %vm759_vm3, %v2149_v15  ;;  %3377 = vmatpush3.bf16.msra.mxu1 %v2479_v14 }
 0xbe1   :  { %3371 = vmatpush3.bf16.msra.mxu0 %v2433_v25  ;;  %3372 = vmatprep.mubr.msk.bf16.mxu0 %vm3718_vm1, %v3717_v8 }
 0xbe2   :  { %v3534_v54 = vpop.eup %3533  ;;  %3378 = vmatprep.mubr.msk.bf16.mxu1 %vm3718_vm1, %v3717_v8  ;;  %3382 = vmatprep.subr.bf16.mxu0 %v3717_v8 }
 0xbe3   :  { %v3536_v53 = vpop.eup %3535  ;;  %v2144_v26 = vmul.f32 %v3534_v54, %v4288_v32  ;;  %3390 = vmatprep.subr.bf16.mxu1 %v3717_v8 }
 0xbe4   :  { %v2143_v29 = vmul.f32 %v3536_v53, %v4290_v22 }
 0xbe5   :  { %v2152_v28 = vpack.c.bf16 %v2144_v26, %v2144_v26 }
 0xbe6   :  { %v2151_v18 = vpack.c.bf16 %v2143_v29, %v2143_v29 }
 0xbe7   :  { %3379 = vmatmul.mubr.msk.bf16.vlgmr.msra.gmra.mrb[76].mxu1 %vm759_vm3, %v2152_v28  ;;  %v3453_v28 = vld [vmem:[#allocation11 + $0x10] sm:$0xff]  }
 0xbe8   :  { %3373 = vmatmul.mubr.msk.bf16.vlgmr.msra.gmra.mrb[80].mxu0 %vm759_vm3, %v2151_v18  ;;  %3394 = vmatprep.mubr.msk.bf16.mxu1 %vm3718_vm1, %v3717_v8  ;;  %v3454_v18 = vld [vmem:[#allocation11 + $0x18] sm:$0xff]  }
 0xbe9   :  { %3386 = vmatprep.mubr.msk.bf16.mxu0 %vm3718_vm1, %v3717_v8  ;;  %3383 = vmatpush3.bf16.msra.mxu0 %v3451_v20 }
 0xbea   :  { %3384 = vmatprep.subr.bf16.mxu0 %v3717_v8  ;;  %3391 = vmatpush3.bf16.msra.mxu1 %v3453_v28 }
 0xbeb   :  { %3392 = vmatprep.subr.bf16.mxu1 %v3717_v8 }
 0xbed   :  { %3385 = vmatpush3.bf16.msra.mxu0 %v3452_v30 }
 0xbee   :  { %3398 = vmatprep.subr.bf16.mxu0 %v3717_v8  ;;  %3393 = vmatpush3.bf16.msra.mxu1 %v3454_v18 }
 0xbef   :  { %3410 = vmatprep.subr.bf16.mxu1 %v3717_v8 }
 0xca2   :  { %v2239_v59 = vpop.f32.mrb[64].mxu1 }
 0xca3   :  { %v2193_v34 = vpop.f32.mrb[68].mxu0  ;;  %v2522_v35 = vsel %vm146_vm0, %v2239_v59, 0.0  ;;  %v3344_v40 = vpop.f32.mrb[65].mxu1 }
 0xca4   :  { %v2521_v41 = vsel %vm146_vm0, %v2193_v34, 0.0  ;;  %v3338_v11 = vpop.f32.mrb[69].mxu0  ;;  %v2242_v42 = vpop.f32.mrb[66].mxu1 }
 0xca5   :  { %v2523_v43 = vadd.f32 %v2522_v35, %v2521_v41  ;;  %v2196_v31 = vpop.f32.mrb[70].mxu0  ;;  %v3345_v44 = vpop.f32.mrb[67].mxu1 }
 0xca6   :  { %v3339_v32 = vpop.f32.mrb[71].mxu0 }
 0xcaa   :  { %v2331_v22 = vpop.f32.mrb[68].mxu1 }
 0xcab   :  { %v2285_v45 = vpop.f32.mrb[72].mxu0  ;;  %v3356_v46 = vpop.f32.mrb[69].mxu1  ;;  %v2526_v48 = vsel %vm146_vm0, %v2331_v22, 0.0 }
 0xcac   :  { %v2524_v27 = vsel %vm146_vm0, %v2285_v45, 0.0  ;;  %v3350_v47 = vpop.f32.mrb[73].mxu0  ;;  %v2334_v50 = vpop.f32.mrb[70].mxu1  ;;  %v3457_v45 = vld [vmem:[%s4422_s10 + $0x30] sm:$0xff]   ;;  %v3458_v46 = vld [vmem:[%s4422_s10 + $0x38] sm:$0xff]  }
 0xcad   :  { %v2525_v38 = vadd.f32 %v2524_v27, %v2523_v43  ;;  %v2288_v51 = vpop.f32.mrb[74].mxu0  ;;  %v3357_v56 = vpop.f32.mrb[71].mxu1  ;;  %v2973_v43 = vld [vmem:[#allocation10 + $0x1] ss:$0 sm:$0xff] }
 0xcae   :  { %v3351_v58 = vpop.f32.mrb[75].mxu0 }
 0xcaf   :  { %v2527_v49 = vadd.f32 %v2526_v48, %v2525_v38 }
 0xcb2   :  { %v2423_v60 = vpop.f32.mrb[72].mxu1 }
 0xcb3   :  { %v2377_v52 = vpop.f32.mrb[76].mxu0  ;;  %v2529_v55 = vsel %vm146_vm0, %v2423_v60, 0.0  ;;  %v3368_v61 = vpop.f32.mrb[73].mxu1 }
 0xcb4   :  { %v2528_v62 = vsel %vm146_vm0, %v2377_v52, 0.0  ;;  %v3362_v2 = vpop.f32.mrb[77].mxu0  ;;  %v2426_v5 = vpop.f32.mrb[74].mxu1 }
 0xcb5   :  { %v2530_v6 = vadd.f32 %v2529_v55, %v2528_v62  ;;  %v2380_v63 = vpop.f32.mrb[78].mxu0  ;;  %v3369_v33 = vpop.f32.mrb[75].mxu1 }
 0xcb6   :  { %v3363_v9 = vpop.f32.mrb[79].mxu0  ;;  %v3459_v33 = vld [vmem:[%s4424_s12] sm:$0xff]  }
 0xcb7   :  { %v3460_v9 = vld [vmem:[%s4424_s12 + $0x8] sm:$0xff]  }
 0xcba   :  { %v2515_v7 = vpop.f32.mrb[76].mxu1 }
 0xcbb   :  { %v2469_v10 = vpop.f32.mrb[80].mxu0  ;;  %v3380_v3 = vpop.f32.mrb[77].mxu1  ;;  %v2533_v36 = vsel %vm146_vm0, %v2515_v7, 0.0 }
 0xcbc   :  { %v2531_v4 = vsel %vm146_vm0, %v2469_v10, 0.0  ;;  %v3374_v12 = vpop.f32.mrb[81].mxu0  ;;  %v2518_v13 = vpop.f32.mrb[78].mxu1 }
 0xcbd   :  { %v2532_v16 = vadd.f32 %v2531_v4, %v2530_v6  ;;  %v2472_v17 = vpop.f32.mrb[82].mxu0  ;;  %v3381_v19 = vpop.f32.mrb[79].mxu1  ;;  %v2990_v12 = vld [vmem:[%s4423_s11] ss:$0 sm:$0xff]  ;;  %s3719_s11 = smov [#allocation13]  }
 0xcbe   :  { %v3375_v37 = vpop.f32.mrb[83].mxu0  ;;  %s2878_s6 = sshll.u32 %s3719_s11, 4  ;;  %s2879_s6 = int_to_ptr.vmem [resolvable:$true] %s2878_s6 }
 0xcbf   :  { %v2534_v21 = vadd.f32 %v2533_v36, %v2532_v16  ;;  %s3675_s30 = scalar_lea.vmem %s2879_s6, 32  ;;  %p3680_p7 = scmp.lt.s32.totalorder %s2879_s6, %s2879_s6 }
 0xcc0   :  { %p3676_p6 = scmp.ne.s32.totalorder %s2879_s6, %s3675_s30  ;;  %p3681_p8 = scmp.lt.s32.totalorder %s3675_s30, %s3675_s30 }
 0xcc1   :  { %v2535_v0 = vpack.c.bf16 %v2534_v21, %v2527_v49 }
 0xcc2   :  { %p3682_p9 = por %p3681_p8, %p3680_p7 }
 0xcc3   :  { %3387 = vmatmul.mubr.msk.bf16.vlgmr.msra.gmra.mrb[84].mxu0 %vm146_vm0, %v2535_v0 }
 0xcc4   :  { %3406 = vmatprep.mubr.msk.bf16.mxu0 %vm3718_vm1, %v3717_v8  ;;  %p3683_p10 = pnand %p3682_p9, %p3676_p6 }
 0xd96   :  { %v2590_v1 = vpop.f32.mrb[84].mxu0 }
 0xd97   :  { %v2597_v23 = vadd.f32 %v2590_v1, %v4164_v39  ;;  %v3388_v24 = vpop.f32.mrb[85].mxu0  ;;  %v3455_v39 = vld [vmem:[%s4422_s10 + $0x20] sm:$0xff]  }
 0xd98   :  { %v2593_v15 = vpop.f32.mrb[86].mxu0  ;;  %3399 = vmatpush3.bf16.msra.mxu0 %v3455_v39 }
 0xd99   :  { %v2598_v14 = vadd.f32 %v2593_v15, %v4166_v57  ;;  %v3389_v25 = vpop.f32.mrb[87].mxu0  ;;  %v2600_v54 = vmul.f32 %v2597_v23, %v2597_v23  ;;  %v3456_v57 = vld [vmem:[%s4422_s10 + $0x28] sm:$0xff]   ;;  %3400 = vmatprep.subr.bf16.mxu0 %v3717_v8  ;;  %v2991_v15 = vld [vmem:[%s4425_s13] ss:$0 sm:$0xff] }
 0xd9b   :  { %v2602_v53 = vsel %vm146_vm0, %v2600_v54, 0.0  ;;  %v2601_v26 = vmul.f32 %v2598_v14, %v2598_v14 }
 0xd9c   :  { %2603 = vadd.xlane.f32.xlu0 %v2602_v53  ;;  %3401 = vmatpush3.bf16.msra.mxu0 %v3456_v57 }
 0xd9d   :  { %v2605_v29 = vsel %vm146_vm0, %v2601_v26, 0.0  ;;  %3402 = vmatprep.subr.bf16.mxu0 %v3717_v8 }
 0xd9e   :  { %2606 = vadd.xlane.f32.xlu1 %v2605_v29 }
 0xda0   :  { %3403 = vmatpush3.bf16.msra.mxu0 %v3457_v45 }
 0xda1   :  { %3404 = vmatprep.subr.bf16.mxu0 %v3717_v8 }
 0xda4   :  { %3405 = vmatpush3.bf16.msra.mxu0 %v3458_v46 }
 0xe29   :  { %v2604_v20 = vpop.xlane.xlu0 %2603 }
 0xe2a   :  { %v2608_v30 = vmul.f32 0.03125, %v2604_v20 }
 0xe2b   :  { %v2607_v59 = vpop.xlane.xlu1 %2606 }
 0xe2c   :  { %v2610_v34 = vadd.f32 1e-06, %v2608_v30  ;;  %v2609_v35 = vmul.f32 0.03125, %v2607_v59 }
 0xe2e   :  { %3537 = vrsqrt.f32 %v2610_v34  ;;  %v2611_v40 = vadd.f32 1e-06, %v2609_v35 }
 0xe30   :  { %3539 = vrsqrt.f32 %v2611_v40 }
 0xe38   :  { %v3538_v41 = vpop.eup %3537 }
 0xe39   :  { %v2614_v11 = vmul.f32 %v3538_v41, %v2597_v23 }
 0xe3a   :  { %v3540_v42 = vpop.eup %3539 }
 0xe3b   :  { %v2615_v31 = vmul.f32 %v3540_v42, %v2598_v14  ;;  %v2620_v32 = vmul.f32 %v2973_v43, %v2614_v11 }
 0xe3d   :  { %v2621_v44 = vmul.f32 %v2973_v43, %v2615_v31 }
 0xe3f   :  { %v2622_v22 = vpack.c.bf16 %v2621_v44, %v2620_v32 }
 0xe41   :  { %3395 = vmatmul.mubr.msk.bf16.vlgmr.msra.gmra.mrb[80].mxu1 %vm146_vm0, %v2622_v22 }
 0xe42   :  { %3414 = vmatprep.mubr.msk.bf16.mxu1 %vm3718_vm1, %v3717_v8  ;;  %3411 = vmatpush3.bf16.msra.mxu1 %v3459_v33 }
 0xe43   :  { %3412 = vmatprep.subr.bf16.mxu1 %v3717_v8 }
 0xe46   :  { %3413 = vmatpush3.bf16.msra.mxu1 %v3460_v9 }
 0xf14   :  { %v2677_v27 = vpop.f32.mrb[80].mxu1 }
 0xf15   :  { %v3396_v47 = vpop.f32.mrb[81].mxu1  ;;  %v2684_v38 = vmax.f32 %v2677_v27, 0.0 }
 0xf16   :  { %v2680_v50 = vpop.f32.mrb[82].mxu1 }
 0xf17   :  { %v2685_v51 = vmax.f32 %v2680_v50, 0.0  ;;  %v3397_v56 = vpop.f32.mrb[83].mxu1 }
 0xf19   :  { %v2686_v48 = vpack.c.bf16 %v2685_v51, %v2684_v38 }
 0xf1b   :  { %3407 = vmatmul.mubr.msk.bf16.vlgmr.msra.gmra.mrb[88].mxu0 %vm1421_vm4, %v2686_v48 }
 0xfee   :  { %v2757_v58 = vpop.f32.mrb[88].mxu0 }
 0xfef   :  { %v3408_v49 = vpop.f32.mrb[89].mxu0  ;;  %v2764_v52 = vadd.f32 %v2757_v58, %v2597_v23 }
 0xff0   :  { %v2760_v60 = vpop.f32.mrb[90].mxu0 }
 0xff1   :  { %v2765_v55 = vadd.f32 %v2760_v60, %v2598_v14  ;;  %v3409_v61 = vpop.f32.mrb[91].mxu0  ;;  %v2767_v2 = vmul.f32 %v2764_v52, %v2764_v52 }
 0xff3   :  { %v2768_v62 = vmul.f32 %v2765_v55, %v2765_v55 }
 0xff5   :  { %v2771_v5 = vrot.slane %v2768_v62, 7 }
 0xff7   :  { %v2773_v6 = vsel %vm2772_vm5, %v2771_v5, %v2767_v2 }
 0xff8   :  { %v2776_v63 = vsel %vm2775_vm6, %v2773_v6, 0.0 }
 0xff9   :  { %2777 = vadd.xlane.f32.xlu0 %v2776_v63 }
0x1086   :  { %v2778_v7 = vpop.xlane.xlu0 %2777 }
0x1087   :  { %v2779_v10 = vmul.f32 0.03125, %v2778_v7 }
0x1089   :  { %v2780_v3 = vadd.f32 1e-06, %v2779_v10 }
0x108b   :  { %3541 = vrsqrt.f32 %v2780_v3 }
0x1095   :  { %v3542_v4 = vpop.eup %3541 }
0x1096   :  { %v2783_v13 = vrot.slane %v3542_v4, 1  ;;  %v2786_v16 = vmul.f32 %v3542_v4, %v2764_v52 }
0x1098   :  { %v2787_v17 = vmul.f32 %v2783_v13, %v2765_v55  ;;  %v2794_v19 = vmul.f32 %v2990_v12, %v2786_v16 }
0x109a   :  { %v2795_v36 = vmul.f32 %v2990_v12, %v2787_v17  ;;  %v2796_v37 = vpack.c.bf16 %v2794_v19, %v2794_v19 }
0x109c   :  { %v2797_v21 = vpack.c.bf16 %v2795_v36, %v2795_v36  ;;  %v2811_v1 = vunpack.c.l.b16 %v2796_v37 }
0x109e   :  { %v2812_v0 = vunpack.c.l.b16 %v2797_v21 }
0x10a0   :  { %v2813_v8 = vrot.slane %v2812_v0, 7 }
0x10a2   :  { %v2814_v23 = vsel %vm2772_vm5, %v2813_v8, %v2811_v1 }
0x10a3   :  { %v2815_v24 = vpack.c.b16 %v2814_v23, %v2814_v23 }
0x10a5   :  { %3415 = vmatmul.mubr.msk.bf16.vlgmr.msra.gmra.mrb[84].mxu1 %vm146_vm0, %v2815_v24 }
0x1178   :  { %v2865_v14 = vpop.f32.mrb[84].mxu1 }
0x1179   :  { %v2866_v25 = vadd.f32 %v2991_v15, %v2865_v14  ;;  %v3416_v54 = vpop.f32.mrb[85].mxu1 }
0x117a   :  { %v2868_v53 = vpop.f32.mrb[86].mxu1 }
0x117b   :  { %2871 = vst [vmem:[#allocation13] sm:$0x3] %v2866_v25  ;;  %v3417_v26 = vpop.f32.mrb[87].mxu1 }
0x117c   :  { %3686 = shalt.err (!%p3683_p10)
}
0x117d   :  { %s3687_s13 = scalar_lea.hbm %s4426_s14, 32 }
0x117e   :  { %p3688_p11 = scmp.ne.s32.totalorder %s4426_s14, %s3687_s13  ;;  %p3691_p12 = scmp.lt.u32.totalorder %s3687_s13, %s4426_s14 }
0x1180   :  { %p3693_p13 = pnand %p3691_p12, %p3688_p11 }
0x1182   :  { %3696 = shalt.err (!%p3693_p13)
}
0x1183   :  { %2881 = dma.vmem_to_hbm [thread:$0]  %s2879_s6, 32, %s4426_s14, [#allocation4]  }
0x1184   :  { %3705 = dma.done.wait [#allocation4], 32  }
0x1185   :  { %3706 = vsyncadd [#allocation4], 4294967264 }
0x1186   :  { %2885 = vsyncpa [#allocation3], 1 }
0x1187   :  { %2886 = vsyncpa [#allocation6], 1 }
0x1188   :  { %2887 = vsyncpa [#allocation9], 1 }
0x1189   :  { %2888 = vsyncpa [#allocation12], 1 }
0x118a   :  { %2889 = vsyncpa [#allocation4], 1 }

</bundles_post_ra>
